<compile_context>
chip_gen: v6e
topology: v6e:2x2x1
jax: 0.10.0
libtpu: 0.0.40
codegen_flags: <defaults>
</compile_context>

<pallas_src>
import jax
import jax.numpy as jnp
from jax.experimental import pallas as pl
from jax.experimental.pallas import tpu as pltpu

INPUT_SIZE = 4     # num_features
HIDDEN = 16        # hidden_size
NUM_LAYERS = 2
BATCH = 2
SEQ = 8


def _lstm_kernel(x_ref,                        # (T*B, F)  time-major, row-flattened
                 wih0_ref, whh0_ref, b0_ref,   # layer 0: (F,4H), (H,4H), (1,4H)
                 w1_ref, b1_ref,               # layer 1 fused: (2H,4H), (1,4H)
                 out_ref):                     # (B, T*H)  lane-dense output slab
    H = HIDDEN
    B = out_ref.shape[0]
    T = out_ref.shape[1] // H

    # Hoisted, time-parallel input projection for layer 0: one (T*B, F) @ (F, 4H)
    # MXU push; rows are time-major so step t is the contiguous block [t*B, (t+1)*B).
    gx0 = jnp.dot(x_ref[...], wih0_ref[...],
                  preferred_element_type=jnp.float32) + b0_ref[...]       # (T*B, 4H)

    whh0 = whh0_ref[...]          # (H, 4H)   g-gate columns pre-scaled by 2
    w1 = w1_ref[...]              # (2H, 4H)  [Wih1.T; Whh1.T], g columns pre-scaled
    b1 = b1_ref[...]              # (1, 4H)

    def cell(gates, c):
        # One full-width sigmoid (single EUP push); candidate gate recovered via
        # tanh(x) = 2*sigmoid(2x) - 1 (the 2x lives in the pre-scaled weights).
        sig = jax.nn.sigmoid(gates)
        i_g = sig[:, 0 * H:1 * H]
        f_g = sig[:, 1 * H:2 * H]
        g_g = 2.0 * sig[:, 2 * H:3 * H] - 1.0
        o_g = sig[:, 3 * H:4 * H]
        c_new = f_g * c + i_g * g_g
        h_new = o_g * jnp.tanh(c_new)          # second (and last) EUP push of the cell
        return h_new, c_new

    h0 = jnp.zeros((B, H), jnp.float32)
    c0 = jnp.zeros((B, H), jnp.float32)
    h1 = jnp.zeros((B, H), jnp.float32)
    c1 = jnp.zeros((B, H), jnp.float32)
    outs = []
    for t in range(T):   # T=8 static -> fully unrolled; layers interleaved so the
                         # scheduler can overlap layer-1 step t with layer-0 step t+1.
        # ---- layer 0, step t: only h0 @ Whh0 sits on the serialized path ----
        g0 = gx0[t * B:(t + 1) * B, :] + jnp.dot(
            h0, whh0, preferred_element_type=jnp.float32)
        h0, c0 = cell(g0, c0)

        # TODO(synk): inter-layer dropout (p=0.2) on h0 omitted — eval-mode semantics.

        # ---- layer 1, step t: single fused matmul [h0_t || h1_{t-1}] @ W1 ----
        g1 = jnp.dot(jnp.concatenate([h0, h1], axis=1), w1,
                     preferred_element_type=jnp.float32) + b1
        h1, c1 = cell(g1, c1)
        outs.append(h1)

    # One unmasked-lane-width store of the whole (B, T*H) = (2, 128) slab.
    out_ref[...] = jnp.concatenate(outs, axis=1).astype(out_ref.dtype)


def lstm_forward(x_btf, params):
    """x_btf: (B, T, F) batch-first, like the PyTorch module. Returns (B, T, H)."""
    B, T, F = x_btf.shape
    H = HIDDEN

    wih0_t, whh0_t, b0 = params["l0"]     # (F,4H), (H,4H), (1,4H)
    w1, b1 = params["l1"]                 # (2H,4H), (1,4H)

    # Time-major, row-flattened input: wrapper-side layout plumbing (free, ~1 KB).
    x_tbf = jnp.transpose(x_btf, (1, 0, 2)).reshape(T * B, F)

    vmem = lambda: pl.BlockSpec(memory_space=pltpu.MemorySpace.VMEM)

    # Single invocation (no grid): the T=8 time recurrence lives inside the kernel.
    # NOTE(v7x): only add a leading 'parallel' batch grid axis for the second
    # TensorCore once the per-core batch tile is >= 8 rows (one f32 sublane tile);
    # at B=2 a split costs more (grid-step overhead + sub-sublane shapes) than it
    # saves.  For real deployments, batch many sequences into ONE pallas_call
    # (weights pinned via a constant index_map so they are fetched once) and size
    # the per-step working set for v7x's 64 MiB VMEM rather than v5e/v6e's 128 MiB.
    out_flat = pl.pallas_call(
        _lstm_kernel,
        out_shape=jax.ShapeDtypeStruct((B, T * H), x_btf.dtype),
        in_specs=[vmem() for _ in range(6)],
        out_specs=vmem(),
    )(x_tbf, wih0_t, whh0_t, b0, w1, b1)

    # (B, T*H) -> (B, T, H): free reshape; column block t is time step t.
    return out_flat.reshape(B, T, H)


def init_params(key):
    """Deterministic init matching PyTorch nn.LSTM shapes (gate order i,f,g,o)."""
    H, F = HIDDEN, INPUT_SIZE
    bound = 1.0 / jnp.sqrt(jnp.float32(H))
    ks = jax.random.split(key, 8)
    u = lambda k, shape: jax.random.uniform(k, shape, jnp.float32, -bound, bound)

    # layer 0: W_ih (4H, F), W_hh (4H, H), b_ih (4H,), b_hh (4H,)
    w_ih0, w_hh0 = u(ks[0], (4 * H, F)), u(ks[1], (4 * H, H))
    b_ih0, b_hh0 = u(ks[2], (4 * H,)), u(ks[3], (4 * H,))
    # layer 1: input is hidden of layer 0
    w_ih1, w_hh1 = u(ks[4], (4 * H, H)), u(ks[5], (4 * H, H))
    b_ih1, b_hh1 = u(ks[6], (4 * H,)), u(ks[7], (4 * H,))

    raw = {"l0": (w_ih0, w_hh0, b_ih0, b_hh0),
           "l1": (w_ih1, w_hh1, b_ih1, b_hh1)}

    # Kernel-friendly form:
    #  * transposed weights, fused bias (b_ih + b_hh) with a leading broadcast axis
    #  * g-gate columns pre-scaled by 2 so the kernel can use tanh(x)=2*sigmoid(2x)-1
    #  * layer 1 stacked as W1 = [Wih1.T; Whh1.T] for one fused matmul per step
    gscale = jnp.concatenate([jnp.ones(2 * H, jnp.float32),
                              2.0 * jnp.ones(H, jnp.float32),
                              jnp.ones(H, jnp.float32)])              # (4H,)

    wih0_t = w_ih0.T * gscale[None, :]                                 # (F, 4H)
    whh0_t = w_hh0.T * gscale[None, :]                                 # (H, 4H)
    b0 = ((b_ih0 + b_hh0) * gscale)[None, :]                           # (1, 4H)
    w1 = jnp.concatenate([w_ih1.T, w_hh1.T], axis=0) * gscale[None, :]  # (2H, 4H)
    b1 = ((b_ih1 + b_hh1) * gscale)[None, :]                           # (1, 4H)

    kern = {"l0": (wih0_t, whh0_t, b0), "l1": (w1, b1)}
    return raw, kern


def reference_lstm(x_btf, raw):
    """Pure-JAX reference (identical math, eval mode) for correctness check."""
    H = HIDDEN
    B, T, _ = x_btf.shape

    def run_layer(x_seq, w_ih, w_hh, b_ih, b_hh):
        def step(carry, x_t):
            h, c = carry
            g = x_t @ w_ih.T + b_ih + h @ w_hh.T + b_hh
            i = jax.nn.sigmoid(g[:, 0 * H:1 * H])
            f = jax.nn.sigmoid(g[:, 1 * H:2 * H])
            gg = jnp.tanh(g[:, 2 * H:3 * H])
            o = jax.nn.sigmoid(g[:, 3 * H:4 * H])
            c = f * c + i * gg
            h = o * jnp.tanh(c)
            return (h, c), h
        init = (jnp.zeros((B, H), jnp.float32), jnp.zeros((B, H), jnp.float32))
        _, hs = jax.lax.scan(step, init, jnp.transpose(x_seq, (1, 0, 2)))
        return jnp.transpose(hs, (1, 0, 2))

    h0 = run_layer(x_btf, *raw["l0"])
    h1 = run_layer(h0, *raw["l1"])
    return h1


if __name__ == "__main__":
    key = jax.random.PRNGKey(0)
    k_x, k_p = jax.random.split(key)
    x = jax.random.normal(k_x, (BATCH, SEQ, INPUT_SIZE), jnp.float32)

    raw_params, kern_params = init_params(k_p)

    out = lstm_forward(x, kern_params)
    out = jax.block_until_ready(out)

    ref = reference_lstm(x, raw_params)
    assert out.shape == (BATCH, SEQ, HIDDEN), out.shape
    # Slightly looser than 1e-5: the tanh(x)=2*sigmoid(2x)-1 reformulation is
    # mathematically exact but not bit-identical in f32.
    assert jnp.allclose(out, ref, atol=2e-5, rtol=2e-5), \
        float(jnp.max(jnp.abs(out - ref)))

    print("KERNEL_OK")
</pallas_src>

<mosaic_0001>
module attributes {stable_mosaic.version = 11 : i64} {
  func.func @_lstm_kernel(%arg0: memref<16x4xf32, #tpu.memory_space<vmem>>, %arg1: memref<4x64xf32, #tpu.memory_space<vmem>>, %arg2: memref<16x64xf32, #tpu.memory_space<vmem>>, %arg3: memref<1x64xf32, #tpu.memory_space<vmem>>, %arg4: memref<32x64xf32, #tpu.memory_space<vmem>>, %arg5: memref<1x64xf32, #tpu.memory_space<vmem>>, %arg6: memref<2x128xf32, #tpu.memory_space<vmem>>) attributes {dimension_semantics = [], scalar_prefetch = 0 : i64, scratch_operands = 0 : i64, tpu.core_type = #tpu.core_type<tc>} {
    %c0 = arith.constant 0 : index
    %c0_0 = arith.constant 0 : index
    %0 = vector.load %arg0[%c0, %c0_0] : memref<16x4xf32, #tpu.memory_space<vmem>>, vector<16x4xf32>
    %c0_1 = arith.constant 0 : index
    %c0_2 = arith.constant 0 : index
    %1 = vector.load %arg1[%c0_1, %c0_2] : memref<4x64xf32, #tpu.memory_space<vmem>>, vector<4x64xf32>
    %cst = arith.constant dense<0.000000e+00> : vector<16x64xf32>
    %2 = tpu.matmul %0, %1, %cst {dimension_numbers = #tpu.dot_dimension_numbers<[1], [0], [0], [1], [0, 0, 1, 1], [], []>} : vector<16x4xf32>, vector<4x64xf32>, vector<16x64xf32> -> vector<16x64xf32>
    %c0_3 = arith.constant 0 : index
    %c0_4 = arith.constant 0 : index
    %3 = vector.load %arg3[%c0_3, %c0_4] : memref<1x64xf32, #tpu.memory_space<vmem>>, vector<1x64xf32>
    %4 = vector.broadcast %3 : vector<1x64xf32> to vector<16x64xf32>
    %5 = arith.addf %2, %4 : vector<16x64xf32>
    %c0_5 = arith.constant 0 : index
    %c0_6 = arith.constant 0 : index
    %6 = vector.load %arg2[%c0_5, %c0_6] : memref<16x64xf32, #tpu.memory_space<vmem>>, vector<16x64xf32>
    %c0_7 = arith.constant 0 : index
    %c0_8 = arith.constant 0 : index
    %7 = vector.load %arg4[%c0_7, %c0_8] : memref<32x64xf32, #tpu.memory_space<vmem>>, vector<32x64xf32>
    %c0_9 = arith.constant 0 : index
    %c0_10 = arith.constant 0 : index
    %8 = vector.load %arg5[%c0_9, %c0_10] : memref<1x64xf32, #tpu.memory_space<vmem>>, vector<1x64xf32>
    %cst_11 = arith.constant 0.000000e+00 : f32
    %9 = vector.broadcast %cst_11 : f32 to vector<2x16xf32>
    %cst_12 = arith.constant 0.000000e+00 : f32
    %10 = vector.broadcast %cst_12 : f32 to vector<2x16xf32>
    %cst_13 = arith.constant 0.000000e+00 : f32
    %11 = vector.broadcast %cst_13 : f32 to vector<2x16xf32>
    %cst_14 = arith.constant 0.000000e+00 : f32
    %12 = vector.broadcast %cst_14 : f32 to vector<2x16xf32>
    %13 = vector.extract_strided_slice %5 {offsets = [0, 0], sizes = [2, 64], strides = [1, 1]} : vector<16x64xf32> to vector<2x64xf32>
    %cst_15 = arith.constant dense<0.000000e+00> : vector<2x64xf32>
    %14 = tpu.matmul %9, %6, %cst_15 {dimension_numbers = #tpu.dot_dimension_numbers<[1], [0], [0], [1], [0, 0, 1, 1], [], []>} : vector<2x16xf32>, vector<16x64xf32>, vector<2x64xf32> -> vector<2x64xf32>
    %15 = arith.addf %13, %14 : vector<2x64xf32>
    %16 = arith.negf %15 : vector<2x64xf32>
    %17 = math.exp %16 : vector<2x64xf32>
    %cst_16 = arith.constant 1.000000e+00 : f32
    %18 = vector.broadcast %cst_16 : f32 to vector<2x64xf32>
    %19 = arith.addf %18, %17 : vector<2x64xf32>
    %20 = arith.divf %18, %19 : vector<2x64xf32>
    %21 = vector.extract_strided_slice %20 {offsets = [0, 0], sizes = [2, 16], strides = [1, 1]} : vector<2x64xf32> to vector<2x16xf32>
    %22 = vector.extract_strided_slice %20 {offsets = [0, 16], sizes = [2, 16], strides = [1, 1]} : vector<2x64xf32> to vector<2x16xf32>
    %23 = vector.extract_strided_slice %20 {offsets = [0, 32], sizes = [2, 16], strides = [1, 1]} : vector<2x64xf32> to vector<2x16xf32>
    %cst_17 = arith.constant 2.000000e+00 : f32
    %24 = vector.broadcast %cst_17 : f32 to vector<2x16xf32>
    %25 = arith.mulf %24, %23 : vector<2x16xf32>
    %cst_18 = arith.constant 1.000000e+00 : f32
    %26 = vector.broadcast %cst_18 : f32 to vector<2x16xf32>
    %27 = arith.subf %25, %26 : vector<2x16xf32>
    %28 = vector.extract_strided_slice %20 {offsets = [0, 48], sizes = [2, 16], strides = [1, 1]} : vector<2x64xf32> to vector<2x16xf32>
    %29 = arith.mulf %22, %10 : vector<2x16xf32>
    %30 = arith.mulf %21, %27 : vector<2x16xf32>
    %31 = arith.addf %29, %30 : vector<2x16xf32>
    %32 = math.tanh %31 : vector<2x16xf32>
    %33 = arith.mulf %28, %32 : vector<2x16xf32>
    %34 = tpu.concatenate %33, %11 in 1 : vector<2x16xf32>, vector<2x16xf32> -> vector<2x32xf32>
    %cst_19 = arith.constant dense<0.000000e+00> : vector<2x64xf32>
    %35 = tpu.matmul %34, %7, %cst_19 {dimension_numbers = #tpu.dot_dimension_numbers<[1], [0], [0], [1], [0, 0, 1, 1], [], []>} : vector<2x32xf32>, vector<32x64xf32>, vector<2x64xf32> -> vector<2x64xf32>
    %36 = vector.broadcast %8 : vector<1x64xf32> to vector<2x64xf32>
    %37 = arith.addf %35, %36 : vector<2x64xf32>
    %38 = arith.negf %37 : vector<2x64xf32>
    %39 = math.exp %38 : vector<2x64xf32>
    %cst_20 = arith.constant 1.000000e+00 : f32
    %40 = vector.broadcast %cst_20 : f32 to vector<2x64xf32>
    %41 = arith.addf %40, %39 : vector<2x64xf32>
    %42 = arith.divf %40, %41 : vector<2x64xf32>
    %43 = vector.extract_strided_slice %42 {offsets = [0, 0], sizes = [2, 16], strides = [1, 1]} : vector<2x64xf32> to vector<2x16xf32>
    %44 = vector.extract_strided_slice %42 {offsets = [0, 16], sizes = [2, 16], strides = [1, 1]} : vector<2x64xf32> to vector<2x16xf32>
    %45 = vector.extract_strided_slice %42 {offsets = [0, 32], sizes = [2, 16], strides = [1, 1]} : vector<2x64xf32> to vector<2x16xf32>
    %cst_21 = arith.constant 2.000000e+00 : f32
    %46 = vector.broadcast %cst_21 : f32 to vector<2x16xf32>
    %47 = arith.mulf %46, %45 : vector<2x16xf32>
    %cst_22 = arith.constant 1.000000e+00 : f32
    %48 = vector.broadcast %cst_22 : f32 to vector<2x16xf32>
    %49 = arith.subf %47, %48 : vector<2x16xf32>
    %50 = vector.extract_strided_slice %42 {offsets = [0, 48], sizes = [2, 16], strides = [1, 1]} : vector<2x64xf32> to vector<2x16xf32>
    %51 = arith.mulf %44, %12 : vector<2x16xf32>
    %52 = arith.mulf %43, %49 : vector<2x16xf32>
    %53 = arith.addf %51, %52 : vector<2x16xf32>
    %54 = math.tanh %53 : vector<2x16xf32>
    %55 = arith.mulf %50, %54 : vector<2x16xf32>
    %56 = vector.extract_strided_slice %5 {offsets = [2, 0], sizes = [2, 64], strides = [1, 1]} : vector<16x64xf32> to vector<2x64xf32>
    %cst_23 = arith.constant dense<0.000000e+00> : vector<2x64xf32>
    %57 = tpu.matmul %33, %6, %cst_23 {dimension_numbers = #tpu.dot_dimension_numbers<[1], [0], [0], [1], [0, 0, 1, 1], [], []>} : vector<2x16xf32>, vector<16x64xf32>, vector<2x64xf32> -> vector<2x64xf32>
    %58 = arith.addf %56, %57 : vector<2x64xf32>
    %59 = arith.negf %58 : vector<2x64xf32>
    %60 = math.exp %59 : vector<2x64xf32>
    %cst_24 = arith.constant 1.000000e+00 : f32
    %61 = vector.broadcast %cst_24 : f32 to vector<2x64xf32>
    %62 = arith.addf %61, %60 : vector<2x64xf32>
    %63 = arith.divf %61, %62 : vector<2x64xf32>
    %64 = vector.extract_strided_slice %63 {offsets = [0, 0], sizes = [2, 16], strides = [1, 1]} : vector<2x64xf32> to vector<2x16xf32>
    %65 = vector.extract_strided_slice %63 {offsets = [0, 16], sizes = [2, 16], strides = [1, 1]} : vector<2x64xf32> to vector<2x16xf32>
    %66 = vector.extract_strided_slice %63 {offsets = [0, 32], sizes = [2, 16], strides = [1, 1]} : vector<2x64xf32> to vector<2x16xf32>
    %cst_25 = arith.constant 2.000000e+00 : f32
    %67 = vector.broadcast %cst_25 : f32 to vector<2x16xf32>
    %68 = arith.mulf %67, %66 : vector<2x16xf32>
    %cst_26 = arith.constant 1.000000e+00 : f32
    %69 = vector.broadcast %cst_26 : f32 to vector<2x16xf32>
    %70 = arith.subf %68, %69 : vector<2x16xf32>
    %71 = vector.extract_strided_slice %63 {offsets = [0, 48], sizes = [2, 16], strides = [1, 1]} : vector<2x64xf32> to vector<2x16xf32>
    %72 = arith.mulf %65, %31 : vector<2x16xf32>
    %73 = arith.mulf %64, %70 : vector<2x16xf32>
    %74 = arith.addf %72, %73 : vector<2x16xf32>
    %75 = math.tanh %74 : vector<2x16xf32>
    %76 = arith.mulf %71, %75 : vector<2x16xf32>
    %77 = tpu.concatenate %76, %55 in 1 : vector<2x16xf32>, vector<2x16xf32> -> vector<2x32xf32>
    %cst_27 = arith.constant dense<0.000000e+00> : vector<2x64xf32>
    %78 = tpu.matmul %77, %7, %cst_27 {dimension_numbers = #tpu.dot_dimension_numbers<[1], [0], [0], [1], [0, 0, 1, 1], [], []>} : vector<2x32xf32>, vector<32x64xf32>, vector<2x64xf32> -> vector<2x64xf32>
    %79 = vector.broadcast %8 : vector<1x64xf32> to vector<2x64xf32>
    %80 = arith.addf %78, %79 : vector<2x64xf32>
    %81 = arith.negf %80 : vector<2x64xf32>
    %82 = math.exp %81 : vector<2x64xf32>
    %cst_28 = arith.constant 1.000000e+00 : f32
    %83 = vector.broadcast %cst_28 : f32 to vector<2x64xf32>
    %84 = arith.addf %83, %82 : vector<2x64xf32>
    %85 = arith.divf %83, %84 : vector<2x64xf32>
    %86 = vector.extract_strided_slice %85 {offsets = [0, 0], sizes = [2, 16], strides = [1, 1]} : vector<2x64xf32> to vector<2x16xf32>
    %87 = vector.extract_strided_slice %85 {offsets = [0, 16], sizes = [2, 16], strides = [1, 1]} : vector<2x64xf32> to vector<2x16xf32>
    %88 = vector.extract_strided_slice %85 {offsets = [0, 32], sizes = [2, 16], strides = [1, 1]} : vector<2x64xf32> to vector<2x16xf32>
    %cst_29 = arith.constant 2.000000e+00 : f32
    %89 = vector.broadcast %cst_29 : f32 to vector<2x16xf32>
    %90 = arith.mulf %89, %88 : vector<2x16xf32>
    %cst_30 = arith.constant 1.000000e+00 : f32
    %91 = vector.broadcast %cst_30 : f32 to vector<2x16xf32>
    %92 = arith.subf %90, %91 : vector<2x16xf32>
    %93 = vector.extract_strided_slice %85 {offsets = [0, 48], sizes = [2, 16], strides = [1, 1]} : vector<2x64xf32> to vector<2x16xf32>
    %94 = arith.mulf %87, %53 : vector<2x16xf32>
    %95 = arith.mulf %86, %92 : vector<2x16xf32>
    %96 = arith.addf %94, %95 : vector<2x16xf32>
    %97 = math.tanh %96 : vector<2x16xf32>
    %98 = arith.mulf %93, %97 : vector<2x16xf32>
    %99 = vector.extract_strided_slice %5 {offsets = [4, 0], sizes = [2, 64], strides = [1, 1]} : vector<16x64xf32> to vector<2x64xf32>
    %cst_31 = arith.constant dense<0.000000e+00> : vector<2x64xf32>
    %100 = tpu.matmul %76, %6, %cst_31 {dimension_numbers = #tpu.dot_dimension_numbers<[1], [0], [0], [1], [0, 0, 1, 1], [], []>} : vector<2x16xf32>, vector<16x64xf32>, vector<2x64xf32> -> vector<2x64xf32>
    %101 = arith.addf %99, %100 : vector<2x64xf32>
    %102 = arith.negf %101 : vector<2x64xf32>
    %103 = math.exp %102 : vector<2x64xf32>
    %cst_32 = arith.constant 1.000000e+00 : f32
    %104 = vector.broadcast %cst_32 : f32 to vector<2x64xf32>
    %105 = arith.addf %104, %103 : vector<2x64xf32>
    %106 = arith.divf %104, %105 : vector<2x64xf32>
    %107 = vector.extract_strided_slice %106 {offsets = [0, 0], sizes = [2, 16], strides = [1, 1]} : vector<2x64xf32> to vector<2x16xf32>
    %108 = vector.extract_strided_slice %106 {offsets = [0, 16], sizes = [2, 16], strides = [1, 1]} : vector<2x64xf32> to vector<2x16xf32>
    %109 = vector.extract_strided_slice %106 {offsets = [0, 32], sizes = [2, 16], strides = [1, 1]} : vector<2x64xf32> to vector<2x16xf32>
    %cst_33 = arith.constant 2.000000e+00 : f32
    %110 = vector.broadcast %cst_33 : f32 to vector<2x16xf32>
    %111 = arith.mulf %110, %109 : vector<2x16xf32>
    %cst_34 = arith.constant 1.000000e+00 : f32
    %112 = vector.broadcast %cst_34 : f32 to vector<2x16xf32>
    %113 = arith.subf %111, %112 : vector<2x16xf32>
    %114 = vector.extract_strided_slice %106 {offsets = [0, 48], sizes = [2, 16], strides = [1, 1]} : vector<2x64xf32> to vector<2x16xf32>
    %115 = arith.mulf %108, %74 : vector<2x16xf32>
    %116 = arith.mulf %107, %113 : vector<2x16xf32>
    %117 = arith.addf %115, %116 : vector<2x16xf32>
    %118 = math.tanh %117 : vector<2x16xf32>
    %119 = arith.mulf %114, %118 : vector<2x16xf32>
    %120 = tpu.concatenate %119, %98 in 1 : vector<2x16xf32>, vector<2x16xf32> -> vector<2x32xf32>
    %cst_35 = arith.constant dense<0.000000e+00> : vector<2x64xf32>
    %121 = tpu.matmul %120, %7, %cst_35 {dimension_numbers = #tpu.dot_dimension_numbers<[1], [0], [0], [1], [0, 0, 1, 1], [], []>} : vector<2x32xf32>, vector<32x64xf32>, vector<2x64xf32> -> vector<2x64xf32>
    %122 = vector.broadcast %8 : vector<1x64xf32> to vector<2x64xf32>
    %123 = arith.addf %121, %122 : vector<2x64xf32>
    %124 = arith.negf %123 : vector<2x64xf32>
    %125 = math.exp %124 : vector<2x64xf32>
    %cst_36 = arith.constant 1.000000e+00 : f32
    %126 = vector.broadcast %cst_36 : f32 to vector<2x64xf32>
    %127 = arith.addf %126, %125 : vector<2x64xf32>
    %128 = arith.divf %126, %127 : vector<2x64xf32>
    %129 = vector.extract_strided_slice %128 {offsets = [0, 0], sizes = [2, 16], strides = [1, 1]} : vector<2x64xf32> to vector<2x16xf32>
    %130 = vector.extract_strided_slice %128 {offsets = [0, 16], sizes = [2, 16], strides = [1, 1]} : vector<2x64xf32> to vector<2x16xf32>
    %131 = vector.extract_strided_slice %128 {offsets = [0, 32], sizes = [2, 16], strides = [1, 1]} : vector<2x64xf32> to vector<2x16xf32>
    %cst_37 = arith.constant 2.000000e+00 : f32
    %132 = vector.broadcast %cst_37 : f32 to vector<2x16xf32>
    %133 = arith.mulf %132, %131 : vector<2x16xf32>
    %cst_38 = arith.constant 1.000000e+00 : f32
    %134 = vector.broadcast %cst_38 : f32 to vector<2x16xf32>
    %135 = arith.subf %133, %134 : vector<2x16xf32>
    %136 = vector.extract_strided_slice %128 {offsets = [0, 48], sizes = [2, 16], strides = [1, 1]} : vector<2x64xf32> to vector<2x16xf32>
    %137 = arith.mulf %130, %96 : vector<2x16xf32>
    %138 = arith.mulf %129, %135 : vector<2x16xf32>
    %139 = arith.addf %137, %138 : vector<2x16xf32>
    %140 = math.tanh %139 : vector<2x16xf32>
    %141 = arith.mulf %136, %140 : vector<2x16xf32>
    %142 = vector.extract_strided_slice %5 {offsets = [6, 0], sizes = [2, 64], strides = [1, 1]} : vector<16x64xf32> to vector<2x64xf32>
    %cst_39 = arith.constant dense<0.000000e+00> : vector<2x64xf32>
    %143 = tpu.matmul %119, %6, %cst_39 {dimension_numbers = #tpu.dot_dimension_numbers<[1], [0], [0], [1], [0, 0, 1, 1], [], []>} : vector<2x16xf32>, vector<16x64xf32>, vector<2x64xf32> -> vector<2x64xf32>
    %144 = arith.addf %142, %143 : vector<2x64xf32>
    %145 = arith.negf %144 : vector<2x64xf32>
    %146 = math.exp %145 : vector<2x64xf32>
    %cst_40 = arith.constant 1.000000e+00 : f32
    %147 = vector.broadcast %cst_40 : f32 to vector<2x64xf32>
    %148 = arith.addf %147, %146 : vector<2x64xf32>
    %149 = arith.divf %147, %148 : vector<2x64xf32>
    %150 = vector.extract_strided_slice %149 {offsets = [0, 0], sizes = [2, 16], strides = [1, 1]} : vector<2x64xf32> to vector<2x16xf32>
    %151 = vector.extract_strided_slice %149 {offsets = [0, 16], sizes = [2, 16], strides = [1, 1]} : vector<2x64xf32> to vector<2x16xf32>
    %152 = vector.extract_strided_slice %149 {offsets = [0, 32], sizes = [2, 16], strides = [1, 1]} : vector<2x64xf32> to vector<2x16xf32>
    %cst_41 = arith.constant 2.000000e+00 : f32
    %153 = vector.broadcast %cst_41 : f32 to vector<2x16xf32>
    %154 = arith.mulf %153, %152 : vector<2x16xf32>
    %cst_42 = arith.constant 1.000000e+00 : f32
    %155 = vector.broadcast %cst_42 : f32 to vector<2x16xf32>
    %156 = arith.subf %154, %155 : vector<2x16xf32>
    %157 = vector.extract_strided_slice %149 {offsets = [0, 48], sizes = [2, 16], strides = [1, 1]} : vector<2x64xf32> to vector<2x16xf32>
    %158 = arith.mulf %151, %117 : vector<2x16xf32>
    %159 = arith.mulf %150, %156 : vector<2x16xf32>
    %160 = arith.addf %158, %159 : vector<2x16xf32>
    %161 = math.tanh %160 : vector<2x16xf32>
    %162 = arith.mulf %157, %161 : vector<2x16xf32>
    %163 = tpu.concatenate %162, %141 in 1 : vector<2x16xf32>, vector<2x16xf32> -> vector<2x32xf32>
    %cst_43 = arith.constant dense<0.000000e+00> : vector<2x64xf32>
    %164 = tpu.matmul %163, %7, %cst_43 {dimension_numbers = #tpu.dot_dimension_numbers<[1], [0], [0], [1], [0, 0, 1, 1], [], []>} : vector<2x32xf32>, vector<32x64xf32>, vector<2x64xf32> -> vector<2x64xf32>
    %165 = vector.broadcast %8 : vector<1x64xf32> to vector<2x64xf32>
    %166 = arith.addf %164, %165 : vector<2x64xf32>
    %167 = arith.negf %166 : vector<2x64xf32>
    %168 = math.exp %167 : vector<2x64xf32>
    %cst_44 = arith.constant 1.000000e+00 : f32
    %169 = vector.broadcast %cst_44 : f32 to vector<2x64xf32>
    %170 = arith.addf %169, %168 : vector<2x64xf32>
    %171 = arith.divf %169, %170 : vector<2x64xf32>
    %172 = vector.extract_strided_slice %171 {offsets = [0, 0], sizes = [2, 16], strides = [1, 1]} : vector<2x64xf32> to vector<2x16xf32>
    %173 = vector.extract_strided_slice %171 {offsets = [0, 16], sizes = [2, 16], strides = [1, 1]} : vector<2x64xf32> to vector<2x16xf32>
    %174 = vector.extract_strided_slice %171 {offsets = [0, 32], sizes = [2, 16], strides = [1, 1]} : vector<2x64xf32> to vector<2x16xf32>
    %cst_45 = arith.constant 2.000000e+00 : f32
    %175 = vector.broadcast %cst_45 : f32 to vector<2x16xf32>
    %176 = arith.mulf %175, %174 : vector<2x16xf32>
    %cst_46 = arith.constant 1.000000e+00 : f32
    %177 = vector.broadcast %cst_46 : f32 to vector<2x16xf32>
    %178 = arith.subf %176, %177 : vector<2x16xf32>
    %179 = vector.extract_strided_slice %171 {offsets = [0, 48], sizes = [2, 16], strides = [1, 1]} : vector<2x64xf32> to vector<2x16xf32>
    %180 = arith.mulf %173, %139 : vector<2x16xf32>
    %181 = arith.mulf %172, %178 : vector<2x16xf32>
    %182 = arith.addf %180, %181 : vector<2x16xf32>
    %183 = math.tanh %182 : vector<2x16xf32>
    %184 = arith.mulf %179, %183 : vector<2x16xf32>
    %185 = vector.extract_strided_slice %5 {offsets = [8, 0], sizes = [2, 64], strides = [1, 1]} : vector<16x64xf32> to vector<2x64xf32>
    %cst_47 = arith.constant dense<0.000000e+00> : vector<2x64xf32>
    %186 = tpu.matmul %162, %6, %cst_47 {dimension_numbers = #tpu.dot_dimension_numbers<[1], [0], [0], [1], [0, 0, 1, 1], [], []>} : vector<2x16xf32>, vector<16x64xf32>, vector<2x64xf32> -> vector<2x64xf32>
    %187 = arith.addf %185, %186 : vector<2x64xf32>
    %188 = arith.negf %187 : vector<2x64xf32>
    %189 = math.exp %188 : vector<2x64xf32>
    %cst_48 = arith.constant 1.000000e+00 : f32
    %190 = vector.broadcast %cst_48 : f32 to vector<2x64xf32>
    %191 = arith.addf %190, %189 : vector<2x64xf32>
    %192 = arith.divf %190, %191 : vector<2x64xf32>
    %193 = vector.extract_strided_slice %192 {offsets = [0, 0], sizes = [2, 16], strides = [1, 1]} : vector<2x64xf32> to vector<2x16xf32>
    %194 = vector.extract_strided_slice %192 {offsets = [0, 16], sizes = [2, 16], strides = [1, 1]} : vector<2x64xf32> to vector<2x16xf32>
    %195 = vector.extract_strided_slice %192 {offsets = [0, 32], sizes = [2, 16], strides = [1, 1]} : vector<2x64xf32> to vector<2x16xf32>
    %cst_49 = arith.constant 2.000000e+00 : f32
    %196 = vector.broadcast %cst_49 : f32 to vector<2x16xf32>
    %197 = arith.mulf %196, %195 : vector<2x16xf32>
    %cst_50 = arith.constant 1.000000e+00 : f32
    %198 = vector.broadcast %cst_50 : f32 to vector<2x16xf32>
    %199 = arith.subf %197, %198 : vector<2x16xf32>
    %200 = vector.extract_strided_slice %192 {offsets = [0, 48], sizes = [2, 16], strides = [1, 1]} : vector<2x64xf32> to vector<2x16xf32>
    %201 = arith.mulf %194, %160 : vector<2x16xf32>
    %202 = arith.mulf %193, %199 : vector<2x16xf32>
    %203 = arith.addf %201, %202 : vector<2x16xf32>
    %204 = math.tanh %203 : vector<2x16xf32>
    %205 = arith.mulf %200, %204 : vector<2x16xf32>
    %206 = tpu.concatenate %205, %184 in 1 : vector<2x16xf32>, vector<2x16xf32> -> vector<2x32xf32>
    %cst_51 = arith.constant dense<0.000000e+00> : vector<2x64xf32>
    %207 = tpu.matmul %206, %7, %cst_51 {dimension_numbers = #tpu.dot_dimension_numbers<[1], [0], [0], [1], [0, 0, 1, 1], [], []>} : vector<2x32xf32>, vector<32x64xf32>, vector<2x64xf32> -> vector<2x64xf32>
    %208 = vector.broadcast %8 : vector<1x64xf32> to vector<2x64xf32>
    %209 = arith.addf %207, %208 : vector<2x64xf32>
    %210 = arith.negf %209 : vector<2x64xf32>
    %211 = math.exp %210 : vector<2x64xf32>
    %cst_52 = arith.constant 1.000000e+00 : f32
    %212 = vector.broadcast %cst_52 : f32 to vector<2x64xf32>
    %213 = arith.addf %212, %211 : vector<2x64xf32>
    %214 = arith.divf %212, %213 : vector<2x64xf32>
    %215 = vector.extract_strided_slice %214 {offsets = [0, 0], sizes = [2, 16], strides = [1, 1]} : vector<2x64xf32> to vector<2x16xf32>
    %216 = vector.extract_strided_slice %214 {offsets = [0, 16], sizes = [2, 16], strides = [1, 1]} : vector<2x64xf32> to vector<2x16xf32>
    %217 = vector.extract_strided_slice %214 {offsets = [0, 32], sizes = [2, 16], strides = [1, 1]} : vector<2x64xf32> to vector<2x16xf32>
    %cst_53 = arith.constant 2.000000e+00 : f32
    %218 = vector.broadcast %cst_53 : f32 to vector<2x16xf32>
    %219 = arith.mulf %218, %217 : vector<2x16xf32>
    %cst_54 = arith.constant 1.000000e+00 : f32
    %220 = vector.broadcast %cst_54 : f32 to vector<2x16xf32>
    %221 = arith.subf %219, %220 : vector<2x16xf32>
    %222 = vector.extract_strided_slice %214 {offsets = [0, 48], sizes = [2, 16], strides = [1, 1]} : vector<2x64xf32> to vector<2x16xf32>
    %223 = arith.mulf %216, %182 : vector<2x16xf32>
    %224 = arith.mulf %215, %221 : vector<2x16xf32>
    %225 = arith.addf %223, %224 : vector<2x16xf32>
    %226 = math.tanh %225 : vector<2x16xf32>
    %227 = arith.mulf %222, %226 : vector<2x16xf32>
    %228 = vector.extract_strided_slice %5 {offsets = [10, 0], sizes = [2, 64], strides = [1, 1]} : vector<16x64xf32> to vector<2x64xf32>
    %cst_55 = arith.constant dense<0.000000e+00> : vector<2x64xf32>
    %229 = tpu.matmul %205, %6, %cst_55 {dimension_numbers = #tpu.dot_dimension_numbers<[1], [0], [0], [1], [0, 0, 1, 1], [], []>} : vector<2x16xf32>, vector<16x64xf32>, vector<2x64xf32> -> vector<2x64xf32>
    %230 = arith.addf %228, %229 : vector<2x64xf32>
    %231 = arith.negf %230 : vector<2x64xf32>
    %232 = math.exp %231 : vector<2x64xf32>
    %cst_56 = arith.constant 1.000000e+00 : f32
    %233 = vector.broadcast %cst_56 : f32 to vector<2x64xf32>
    %234 = arith.addf %233, %232 : vector<2x64xf32>
    %235 = arith.divf %233, %234 : vector<2x64xf32>
    %236 = vector.extract_strided_slice %235 {offsets = [0, 0], sizes = [2, 16], strides = [1, 1]} : vector<2x64xf32> to vector<2x16xf32>
    %237 = vector.extract_strided_slice %235 {offsets = [0, 16], sizes = [2, 16], strides = [1, 1]} : vector<2x64xf32> to vector<2x16xf32>
    %238 = vector.extract_strided_slice %235 {offsets = [0, 32], sizes = [2, 16], strides = [1, 1]} : vector<2x64xf32> to vector<2x16xf32>
    %cst_57 = arith.constant 2.000000e+00 : f32
    %239 = vector.broadcast %cst_57 : f32 to vector<2x16xf32>
    %240 = arith.mulf %239, %238 : vector<2x16xf32>
    %cst_58 = arith.constant 1.000000e+00 : f32
    %241 = vector.broadcast %cst_58 : f32 to vector<2x16xf32>
    %242 = arith.subf %240, %241 : vector<2x16xf32>
    %243 = vector.extract_strided_slice %235 {offsets = [0, 48], sizes = [2, 16], strides = [1, 1]} : vector<2x64xf32> to vector<2x16xf32>
    %244 = arith.mulf %237, %203 : vector<2x16xf32>
    %245 = arith.mulf %236, %242 : vector<2x16xf32>
    %246 = arith.addf %244, %245 : vector<2x16xf32>
    %247 = math.tanh %246 : vector<2x16xf32>
    %248 = arith.mulf %243, %247 : vector<2x16xf32>
    %249 = tpu.concatenate %248, %227 in 1 : vector<2x16xf32>, vector<2x16xf32> -> vector<2x32xf32>
    %cst_59 = arith.constant dense<0.000000e+00> : vector<2x64xf32>
    %250 = tpu.matmul %249, %7, %cst_59 {dimension_numbers = #tpu.dot_dimension_numbers<[1], [0], [0], [1], [0, 0, 1, 1], [], []>} : vector<2x32xf32>, vector<32x64xf32>, vector<2x64xf32> -> vector<2x64xf32>
    %251 = vector.broadcast %8 : vector<1x64xf32> to vector<2x64xf32>
    %252 = arith.addf %250, %251 : vector<2x64xf32>
    %253 = arith.negf %252 : vector<2x64xf32>
    %254 = math.exp %253 : vector<2x64xf32>
    %cst_60 = arith.constant 1.000000e+00 : f32
    %255 = vector.broadcast %cst_60 : f32 to vector<2x64xf32>
    %256 = arith.addf %255, %254 : vector<2x64xf32>
    %257 = arith.divf %255, %256 : vector<2x64xf32>
    %258 = vector.extract_strided_slice %257 {offsets = [0, 0], sizes = [2, 16], strides = [1, 1]} : vector<2x64xf32> to vector<2x16xf32>
    %259 = vector.extract_strided_slice %257 {offsets = [0, 16], sizes = [2, 16], strides = [1, 1]} : vector<2x64xf32> to vector<2x16xf32>
    %260 = vector.extract_strided_slice %257 {offsets = [0, 32], sizes = [2, 16], strides = [1, 1]} : vector<2x64xf32> to vector<2x16xf32>
    %cst_61 = arith.constant 2.000000e+00 : f32
    %261 = vector.broadcast %cst_61 : f32 to vector<2x16xf32>
    %262 = arith.mulf %261, %260 : vector<2x16xf32>
    %cst_62 = arith.constant 1.000000e+00 : f32
    %263 = vector.broadcast %cst_62 : f32 to vector<2x16xf32>
    %264 = arith.subf %262, %263 : vector<2x16xf32>
    %265 = vector.extract_strided_slice %257 {offsets = [0, 48], sizes = [2, 16], strides = [1, 1]} : vector<2x64xf32> to vector<2x16xf32>
    %266 = arith.mulf %259, %225 : vector<2x16xf32>
    %267 = arith.mulf %258, %264 : vector<2x16xf32>
    %268 = arith.addf %266, %267 : vector<2x16xf32>
    %269 = math.tanh %268 : vector<2x16xf32>
    %270 = arith.mulf %265, %269 : vector<2x16xf32>
    %271 = vector.extract_strided_slice %5 {offsets = [12, 0], sizes = [2, 64], strides = [1, 1]} : vector<16x64xf32> to vector<2x64xf32>
    %cst_63 = arith.constant dense<0.000000e+00> : vector<2x64xf32>
    %272 = tpu.matmul %248, %6, %cst_63 {dimension_numbers = #tpu.dot_dimension_numbers<[1], [0], [0], [1], [0, 0, 1, 1], [], []>} : vector<2x16xf32>, vector<16x64xf32>, vector<2x64xf32> -> vector<2x64xf32>
    %273 = arith.addf %271, %272 : vector<2x64xf32>
    %274 = arith.negf %273 : vector<2x64xf32>
    %275 = math.exp %274 : vector<2x64xf32>
    %cst_64 = arith.constant 1.000000e+00 : f32
    %276 = vector.broadcast %cst_64 : f32 to vector<2x64xf32>
    %277 = arith.addf %276, %275 : vector<2x64xf32>
    %278 = arith.divf %276, %277 : vector<2x64xf32>
    %279 = vector.extract_strided_slice %278 {offsets = [0, 0], sizes = [2, 16], strides = [1, 1]} : vector<2x64xf32> to vector<2x16xf32>
    %280 = vector.extract_strided_slice %278 {offsets = [0, 16], sizes = [2, 16], strides = [1, 1]} : vector<2x64xf32> to vector<2x16xf32>
    %281 = vector.extract_strided_slice %278 {offsets = [0, 32], sizes = [2, 16], strides = [1, 1]} : vector<2x64xf32> to vector<2x16xf32>
    %cst_65 = arith.constant 2.000000e+00 : f32
    %282 = vector.broadcast %cst_65 : f32 to vector<2x16xf32>
    %283 = arith.mulf %282, %281 : vector<2x16xf32>
    %cst_66 = arith.constant 1.000000e+00 : f32
    %284 = vector.broadcast %cst_66 : f32 to vector<2x16xf32>
    %285 = arith.subf %283, %284 : vector<2x16xf32>
    %286 = vector.extract_strided_slice %278 {offsets = [0, 48], sizes = [2, 16], strides = [1, 1]} : vector<2x64xf32> to vector<2x16xf32>
    %287 = arith.mulf %280, %246 : vector<2x16xf32>
    %288 = arith.mulf %279, %285 : vector<2x16xf32>
    %289 = arith.addf %287, %288 : vector<2x16xf32>
    %290 = math.tanh %289 : vector<2x16xf32>
    %291 = arith.mulf %286, %290 : vector<2x16xf32>
    %292 = tpu.concatenate %291, %270 in 1 : vector<2x16xf32>, vector<2x16xf32> -> vector<2x32xf32>
    %cst_67 = arith.constant dense<0.000000e+00> : vector<2x64xf32>
    %293 = tpu.matmul %292, %7, %cst_67 {dimension_numbers = #tpu.dot_dimension_numbers<[1], [0], [0], [1], [0, 0, 1, 1], [], []>} : vector<2x32xf32>, vector<32x64xf32>, vector<2x64xf32> -> vector<2x64xf32>
    %294 = vector.broadcast %8 : vector<1x64xf32> to vector<2x64xf32>
    %295 = arith.addf %293, %294 : vector<2x64xf32>
    %296 = arith.negf %295 : vector<2x64xf32>
    %297 = math.exp %296 : vector<2x64xf32>
    %cst_68 = arith.constant 1.000000e+00 : f32
    %298 = vector.broadcast %cst_68 : f32 to vector<2x64xf32>
    %299 = arith.addf %298, %297 : vector<2x64xf32>
    %300 = arith.divf %298, %299 : vector<2x64xf32>
    %301 = vector.extract_strided_slice %300 {offsets = [0, 0], sizes = [2, 16], strides = [1, 1]} : vector<2x64xf32> to vector<2x16xf32>
    %302 = vector.extract_strided_slice %300 {offsets = [0, 16], sizes = [2, 16], strides = [1, 1]} : vector<2x64xf32> to vector<2x16xf32>
    %303 = vector.extract_strided_slice %300 {offsets = [0, 32], sizes = [2, 16], strides = [1, 1]} : vector<2x64xf32> to vector<2x16xf32>
    %cst_69 = arith.constant 2.000000e+00 : f32
    %304 = vector.broadcast %cst_69 : f32 to vector<2x16xf32>
    %305 = arith.mulf %304, %303 : vector<2x16xf32>
    %cst_70 = arith.constant 1.000000e+00 : f32
    %306 = vector.broadcast %cst_70 : f32 to vector<2x16xf32>
    %307 = arith.subf %305, %306 : vector<2x16xf32>
    %308 = vector.extract_strided_slice %300 {offsets = [0, 48], sizes = [2, 16], strides = [1, 1]} : vector<2x64xf32> to vector<2x16xf32>
    %309 = arith.mulf %302, %268 : vector<2x16xf32>
    %310 = arith.mulf %301, %307 : vector<2x16xf32>
    %311 = arith.addf %309, %310 : vector<2x16xf32>
    %312 = math.tanh %311 : vector<2x16xf32>
    %313 = arith.mulf %308, %312 : vector<2x16xf32>
    %314 = vector.extract_strided_slice %5 {offsets = [14, 0], sizes = [2, 64], strides = [1, 1]} : vector<16x64xf32> to vector<2x64xf32>
    %cst_71 = arith.constant dense<0.000000e+00> : vector<2x64xf32>
    %315 = tpu.matmul %291, %6, %cst_71 {dimension_numbers = #tpu.dot_dimension_numbers<[1], [0], [0], [1], [0, 0, 1, 1], [], []>} : vector<2x16xf32>, vector<16x64xf32>, vector<2x64xf32> -> vector<2x64xf32>
    %316 = arith.addf %314, %315 : vector<2x64xf32>
    %317 = arith.negf %316 : vector<2x64xf32>
    %318 = math.exp %317 : vector<2x64xf32>
    %cst_72 = arith.constant 1.000000e+00 : f32
    %319 = vector.broadcast %cst_72 : f32 to vector<2x64xf32>
    %320 = arith.addf %319, %318 : vector<2x64xf32>
    %321 = arith.divf %319, %320 : vector<2x64xf32>
    %322 = vector.extract_strided_slice %321 {offsets = [0, 0], sizes = [2, 16], strides = [1, 1]} : vector<2x64xf32> to vector<2x16xf32>
    %323 = vector.extract_strided_slice %321 {offsets = [0, 16], sizes = [2, 16], strides = [1, 1]} : vector<2x64xf32> to vector<2x16xf32>
    %324 = vector.extract_strided_slice %321 {offsets = [0, 32], sizes = [2, 16], strides = [1, 1]} : vector<2x64xf32> to vector<2x16xf32>
    %cst_73 = arith.constant 2.000000e+00 : f32
    %325 = vector.broadcast %cst_73 : f32 to vector<2x16xf32>
    %326 = arith.mulf %325, %324 : vector<2x16xf32>
    %cst_74 = arith.constant 1.000000e+00 : f32
    %327 = vector.broadcast %cst_74 : f32 to vector<2x16xf32>
    %328 = arith.subf %326, %327 : vector<2x16xf32>
    %329 = vector.extract_strided_slice %321 {offsets = [0, 48], sizes = [2, 16], strides = [1, 1]} : vector<2x64xf32> to vector<2x16xf32>
    %330 = arith.mulf %323, %289 : vector<2x16xf32>
    %331 = arith.mulf %322, %328 : vector<2x16xf32>
    %332 = arith.addf %330, %331 : vector<2x16xf32>
    %333 = math.tanh %332 : vector<2x16xf32>
    %334 = arith.mulf %329, %333 : vector<2x16xf32>
    %335 = tpu.concatenate %334, %313 in 1 : vector<2x16xf32>, vector<2x16xf32> -> vector<2x32xf32>
    %cst_75 = arith.constant dense<0.000000e+00> : vector<2x64xf32>
    %336 = tpu.matmul %335, %7, %cst_75 {dimension_numbers = #tpu.dot_dimension_numbers<[1], [0], [0], [1], [0, 0, 1, 1], [], []>} : vector<2x32xf32>, vector<32x64xf32>, vector<2x64xf32> -> vector<2x64xf32>
    %337 = vector.broadcast %8 : vector<1x64xf32> to vector<2x64xf32>
    %338 = arith.addf %336, %337 : vector<2x64xf32>
    %339 = arith.negf %338 : vector<2x64xf32>
    %340 = math.exp %339 : vector<2x64xf32>
    %cst_76 = arith.constant 1.000000e+00 : f32
    %341 = vector.broadcast %cst_76 : f32 to vector<2x64xf32>
    %342 = arith.addf %341, %340 : vector<2x64xf32>
    %343 = arith.divf %341, %342 : vector<2x64xf32>
    %344 = vector.extract_strided_slice %343 {offsets = [0, 0], sizes = [2, 16], strides = [1, 1]} : vector<2x64xf32> to vector<2x16xf32>
    %345 = vector.extract_strided_slice %343 {offsets = [0, 16], sizes = [2, 16], strides = [1, 1]} : vector<2x64xf32> to vector<2x16xf32>
    %346 = vector.extract_strided_slice %343 {offsets = [0, 32], sizes = [2, 16], strides = [1, 1]} : vector<2x64xf32> to vector<2x16xf32>
    %cst_77 = arith.constant 2.000000e+00 : f32
    %347 = vector.broadcast %cst_77 : f32 to vector<2x16xf32>
    %348 = arith.mulf %347, %346 : vector<2x16xf32>
    %cst_78 = arith.constant 1.000000e+00 : f32
    %349 = vector.broadcast %cst_78 : f32 to vector<2x16xf32>
    %350 = arith.subf %348, %349 : vector<2x16xf32>
    %351 = vector.extract_strided_slice %343 {offsets = [0, 48], sizes = [2, 16], strides = [1, 1]} : vector<2x64xf32> to vector<2x16xf32>
    %352 = arith.mulf %345, %311 : vector<2x16xf32>
    %353 = arith.mulf %344, %350 : vector<2x16xf32>
    %354 = arith.addf %352, %353 : vector<2x16xf32>
    %355 = math.tanh %354 : vector<2x16xf32>
    %356 = arith.mulf %351, %355 : vector<2x16xf32>
    %357 = tpu.concatenate %55, %98, %141, %184, %227, %270, %313, %356 in 1 : vector<2x16xf32>, vector<2x16xf32>, vector<2x16xf32>, vector<2x16xf32>, vector<2x16xf32>, vector<2x16xf32>, vector<2x16xf32>, vector<2x16xf32> -> vector<2x128xf32>
    %c0_79 = arith.constant 0 : index
    %c0_80 = arith.constant 0 : index
    %358 = vector.load %arg6[%c0_79, %c0_80] : memref<2x128xf32, #tpu.memory_space<vmem>>, vector<2x128xf32>
    tpu.vector_store %arg6[%c0_79, %c0_80], %357 {strides = array<i32>} : memref<2x128xf32, #tpu.memory_space<vmem>>, vector<2x128xf32>,
    return
  }
}

</mosaic_0001>

<bundles_post_ra>
// kernel: tpu_custom_call.1
= control target key start
LH: loop header
LB: loop body
LE: loop exit
PB: predicated region body
PF: predicated region fallthrough
CT: control target
= control target key end

     0   :  { %11 = vsyncpa [#allocation3], 0  ;;  %s2734_s0 = inlined_call_operand.vmem [shape: f32[16,4], index: 0, kind: input, shape index: {}]   ;;  %s2735_s1 = inlined_call_operand.vmem [shape: f32[4,64], index: 1, kind: input, shape index: {}]   ;;  %s2736_s2 = inlined_call_operand.vmem [shape: f32[16,64], index: 2, kind: input, shape index: {}]   ;;  %s2737_s3 = inlined_call_operand.vmem [shape: f32[1,64], index: 3, kind: input, shape index: {}]   ;;  %s2738_s4 = inlined_call_operand.hbm [shape: f32[32,64], index: 4, kind: input, shape index: {}]   ;;  %s2739_s5 = inlined_call_operand.vmem [shape: f32[1,64], index: 5, kind: input, shape index: {}]   ;;  %s2740_s6 = inlined_call_operand.hbm [shape: f32[2,128], index: 6, kind: output, shape index: {}]  }
   0x1   :  { %12 = vsyncpa [#allocation4], 0  ;;  %s2323_s21 = smov [#allocation2]  }
   0x2   :  { %s26_s22 = sshll.u32 %s2323_s21, 4  ;;  %s27_s22 = int_to_ptr.vmem [resolvable:$true] %s26_s22 }
   0x3   :  { %s2287_s23 = scalar_lea.vmem %s27_s22, 512  ;;  %p2292_p1 = scmp.lt.s32.totalorder %s27_s22, %s27_s22 }
   0x4   :  { %p2288_p0 = scmp.ne.s32.totalorder %s27_s22, %s2287_s23  ;;  %p2293_p2 = scmp.lt.s32.totalorder %s2287_s23, %s2287_s23 }
   0x6   :  { %p2294_p3 = por %p2293_p2, %p2292_p1 }
   0x8   :  { %p2295_p4 = pnand %p2294_p3, %p2288_p0 }
   0xa   :  { %2298 = shalt.err (!%p2295_p4)
}
   0xb   :  { %s2324_s24 = smov 128   ;;  %s2325_s25 = smov 8  }
   0xc   :  { %32 = dma.hbm_to_vmem [thread:$0]  %s2738_s4, 512, %s27_s22, [#allocation3], %s2324_s24, %s2324_s24, %s2325_s25  }
   0xd   :  { %2319 = dma.done.wait [#allocation3], 512  }
   0xe   :  { %2320 = vsyncadd [#allocation3], 4294966784  ;;  %v2326_v0 = vmov 0.0   ;;  %vm2327_vm0 = vmmov 0   ;;  %vm55_vm1 = vcmask 1043456   ;;  %vm48_vm2 = vcmask 31744  }
   0xf   :  { %2044 = vmatprep.subr.mxu1 %v2326_v0  ;;  %2048 = vmatprep.mubr.msk.f32.mxu1 %vm2327_vm0, %v2326_v0  ;;  %v40_v1 = vld [vmem:[%s2735_s1] sm:$0xf]  ;;  %v39_v3 = vld [vmem:[%s2734_s0 + $0x8] sm:$0xff]  ;;  %s2328_s12 = smov 96   ;;  %v2423_v25 = vld [vmem:[#allocation2 + $0x18] sm:$0xff]  ;;  %s2330_s13 = smov 32  }
  0x10   :  { %v38_v2 = vld [vmem:[%s2734_s0] sm:$0xff]  ;;  %2021 = vmatprep.subr.msk.mxu0 %vm55_vm1, %v40_v1  ;;  %v2389_v4 = vld [vmem:[%s2736_s2 + $0x8] sm:$0xff]  ;;  %v2425_v26 = vld [vmem:[#allocation2 + $0x10] sm:$0xff]  ;;  %s2331_s14 = smov 80   ;;  %vm141_vm3 = vcmask 130048   ;;  %vm252_vm4 = vcmask 261120  }
  0x11   :  { %2023 = vmatprep.mubr.msk.f32.mxu0 %vm48_vm2, %v38_v2  ;;  %2022 = vmatpush3.msk.msra.mxu0 %vm55_vm1, %v40_v1  ;;  %v2396_v5 = vld [vmem:[%s2736_s2] sm:$0xff]  ;;  %v2429_v27 = vld [vmem:[#allocation2 + $0x8] sm:$0xff]  ;;  %s2333_s17 = smov 48   ;;  %s2334_s18 = smov 64   ;;  %vm1876_vm5 = vcmask 392192   ;;  %vm1878_vm6 = vcmask 523264  }
  0x12   :  { %2045 = vmatpush3.msra.mxu1 %v2389_v4  ;;  %2024 = vmatmul.mubr.msk.f32.vlgmr.msra.gmra.mxu0 %vm48_vm2, %v39_v3  ;;  %v1902_v6 = vld [vmem:[%s2737_s3] ss:$0 sm:$0xff]  ;;  %s2329_s3 = smov 16   ;;  %vm1880_vm7 = vcmask 654336   ;;  %vm1882_vm8 = vcmask 785408   ;;  %s2335_s19 = smov [#allocation5]  }
  0x13   :  { %2026 = vmatprep.subr.mxu0 %v2326_v0  ;;  %2030 = vmatprep.mubr.msk.f32.mxu0 %vm2327_vm0, %v2326_v0  ;;  %v2436_v29 = vld [vmem:[#allocation2] sm:$0xff]  ;;  %s1893_s20 = sshll.u32 %s2335_s19, 4  ;;  %vm1884_vm9 = vcmask 916480   ;;  %s1894_s20 = int_to_ptr.vmem [resolvable:$true] %s1893_s20 }
  0x14   :  { %2027 = vmatpush3.msra.mxu0 %v2389_v4  ;;  %2046 = vmatprep.subr.mxu1 %v2326_v0  ;;  %v2463_v34 = vld [vmem:[%s2739_s5] ss:$0 sm:$0xff]  ;;  %s2332_s5 = smov 112   ;;  %s2299_s21 = scalar_lea.vmem %s1894_s20, 32 }
  0x15   :  { %2028 = vmatprep.subr.mxu0 %v2326_v0  ;;  %2047 = vmatpush3.msra.mxu1 %v2396_v5  ;;  %p2300_p5 = scmp.ne.s32.totalorder %s1894_s20, %s2299_s21  ;;  %p2304_p6 = scmp.lt.s32.totalorder %s1894_s20, %s1894_s20 }
  0x16   :  { %2029 = vmatpush3.msra.mxu0 %v2396_v5  ;;  %2051 = vmatprep.subr.mxu1 %v2326_v0  ;;  %p2305_p7 = scmp.lt.s32.totalorder %s2299_s21, %s2299_s21 }
  0x17   :  { %2031 = vmatmul.mubr.f32.vlgmr.msra.gmra.mxu0 %v2326_v0  ;;  %2033 = vmatprep.subr.mxu0 %v2326_v0 }
  0x18   :  { %2041 = vmatprep.mubr.msk.f32.mxu0 %vm2327_vm0, %v2326_v0  ;;  %2034 = vmatpush3.msra.mxu0 %v2423_v25  ;;  %p2306_p8 = por %p2305_p7, %p2304_p6 }
  0x19   :  { %2035 = vmatprep.subr.mxu0 %v2326_v0 }
  0x1a   :  { %2036 = vmatpush3.msra.mxu0 %v2425_v26  ;;  %p2307_p9 = pnand %p2306_p8, %p2300_p5 }
  0x1b   :  { %2037 = vmatprep.subr.mxu0 %v2326_v0 }
  0x1c   :  { %2038 = vmatpush3.msra.mxu0 %v2429_v27 }
  0x1d   :  { %2039 = vmatprep.subr.mxu0 %v2326_v0 }
  0x1e   :  { %2040 = vmatpush3.msra.mxu0 %v2436_v29 }
  0x1f   :  { %2062 = vmatprep.subr.mxu0 %v2326_v0 }
  0xd2   :  { %v2025_v7 = vpop.f32.mrf.mxu0 }
  0xd3   :  { %v2413_v8 = vadd.f32 %v2025_v7, %v1902_v6 }
  0xd4   :  { %v125_v9 = vpop.f32.mrf.mxu0 }
  0xd5   :  { %v2415_v10 = vadd.f32 %v1902_v6, %v125_v9 }
  0xd7   :  { %v211_v11 = vpop.f32.mrf.mxu0 }
  0xd8   :  { %v215_v12 = vadd.f32 %v211_v11, %v2415_v10 }
  0xd9   :  { %v2032_v13 = vpop.f32.mrf.mxu0 }
  0xda   :  { %v1906_v14 = vmul.f32 -1.442695, %v215_v12 }
  0xdc   :  { %2183 = vpow2.f32 %v1906_v14 }
  0xe9   :  { %v2184_v15 = vpop.eup %2183 }
  0xea   :  { %v219_v16 = vadd.f32 1.0, %v2184_v15 }
  0xec   :  { %2185 = vrcp.f32 %v219_v16 }
  0xf9   :  { %v2186_v17 = vpop.eup %2185 }
  0xfa   :  { %v222_v18 = vmul.f32 2.0, %v2186_v17  ;;  %v224_v22 = vmul.f32 0.0, %v2186_v17 }
  0xfc   :  { %v1907_v19 = vadd.f32 -1.0, %v222_v18 }
  0xfe   :  { %226 = vrot.lane.b32.xlu0 %v1907_v19, %s2328_s12 }
 0x170   :  { %v227_v20 = vpop.permute.xlu0 %226 }
 0x171   :  { %v229_v21 = vmul.f32 %v2186_v17, %v227_v20 }
 0x173   :  { %231 = vrot.lane.b32.xlu0 %v229_v21, %s2329_s3 }
 0x1e5   :  { %v232_v23 = vpop.permute.xlu0 %231 }
 0x1e6   :  { %v2420_v24 = vadd.f32 %v232_v23, %v224_v22 }
 0x1e8   :  { %2187 = vtanh.f32 %v2420_v24  ;;  %v436_v58 = vrot.slane %v2420_v24, 6 }
 0x1f5   :  { %v2188_v28 = vpop.eup %2187 }
 0x1f6   :  { %237 = vrot.lane.b32.xlu1 %v2188_v28, %s2330_s13 }
 0x268   :  { %v238_v30 = vpop.permute.xlu1 %237 }
 0x269   :  { %v240_v31 = vmul.f32 %v2186_v17, %v238_v30 }
 0x26b   :  { %242 = vrot.lane.b32.xlu1 %v240_v31, %s2331_s14 }
 0x2dd   :  { %v243_v32 = vpop.permute.xlu1 %242 }
 0x2de   :  { %v245_v33 = vsel %vm141_vm3, %v243_v32, 0.0  ;;  %2049 = vmatmul.mubr.msk.f32.vlgmr.msra.gmra.mxu1 %vm141_vm3, %v243_v32 }
 0x2df   :  { %2042 = vmatmul.mubr.msk.f32.vlgmr.msra.gmra.mxu0 %vm252_vm4, %v245_v33  ;;  %2052 = vmatpush3.msra.mxu1 %v2423_v25 }
 0x2e0   :  { %2053 = vmatprep.subr.mxu1 %v2326_v0  ;;  %2063 = vmatpush3.msra.mxu0 %v2389_v4 }
 0x2e1   :  { %2054 = vmatpush3.msra.mxu1 %v2425_v26  ;;  %2064 = vmatprep.subr.mxu0 %v2326_v0 }
 0x2e2   :  { %2055 = vmatprep.subr.mxu1 %v2326_v0  ;;  %2059 = vmatprep.mubr.msk.f32.mxu1 %vm2327_vm0, %v2326_v0 }
 0x2e3   :  { %2056 = vmatpush3.msra.mxu1 %v2429_v27  ;;  %2065 = vmatpush3.msra.mxu0 %v2396_v5 }
 0x2e4   :  { %2057 = vmatprep.subr.mxu1 %v2326_v0  ;;  %2066 = vmatprep.mubr.msk.f32.mxu0 %vm2327_vm0, %v2326_v0 }
 0x2e5   :  { %2058 = vmatpush3.msra.mxu1 %v2436_v29  ;;  %2069 = vmatprep.subr.mxu0 %v2326_v0 }
 0x2e6   :  { %2080 = vmatprep.subr.mxu1 %v2326_v0 }
 0x39e   :  { %v419_v35 = vpop.f32.mrf.mxu1 }
 0x39f   :  { %v424_v36 = vrot.slane %v419_v35, 6  ;;  %v322_v37 = vpop.f32.mrf.mxu0 }
 0x3a0   :  { %v323_v38 = vadd.f32 %v2463_v34, %v322_v37  ;;  %v2050_v39 = vpop.f32.mrf.mxu1 }
 0x3a1   :  { %v426_v40 = vadd.f32 %v424_v36, %v2415_v10  ;;  %v2043_v41 = vpop.f32.mrf.mxu0 }
 0x3a2   :  { %v1910_v42 = vmul.f32 -1.442695, %v323_v38 }
 0x3a3   :  { %v1913_v43 = vmul.f32 -1.442695, %v426_v40 }
 0x3a4   :  { %2189 = vpow2.f32 %v1910_v42 }
 0x3a5   :  { %2191 = vpow2.f32 %v1913_v43 }
 0x3b1   :  { %v2190_v44 = vpop.eup %2189 }
 0x3b2   :  { %v2192_v45 = vpop.eup %2191  ;;  %v329_v46 = vadd.f32 1.0, %v2190_v44 }
 0x3b3   :  { %v430_v47 = vadd.f32 1.0, %v2192_v45 }
 0x3b4   :  { %2193 = vrcp.f32 %v329_v46 }
 0x3b5   :  { %2195 = vrcp.f32 %v430_v47 }
 0x3c1   :  { %v2194_v48 = vpop.eup %2193 }
 0x3c2   :  { %v2196_v49 = vpop.eup %2195  ;;  %v332_v50 = vmul.f32 2.0, %v2194_v48  ;;  %v334_v59 = vmul.f32 0.0, %v2194_v48 }
 0x3c3   :  { %v433_v51 = vmul.f32 2.0, %v2196_v49  ;;  %v438_v61 = vmul.f32 %v2196_v49, %v436_v58 }
 0x3c4   :  { %v1911_v52 = vadd.f32 -1.0, %v332_v50 }
 0x3c5   :  { %v1914_v53 = vadd.f32 -1.0, %v433_v51 }
 0x3c6   :  { %336 = vrot.lane.b32.xlu0 %v1911_v52, %s2328_s12 }
 0x3c7   :  { %440 = vrot.lane.b32.xlu1 %v1914_v53, %s2328_s12 }
 0x438   :  { %v337_v54 = vpop.permute.xlu0 %336 }
 0x439   :  { %v339_v55 = vmul.f32 %v2194_v48, %v337_v54  ;;  %v441_v56 = vpop.permute.xlu1 %440 }
 0x43a   :  { %v443_v57 = vmul.f32 %v2196_v49, %v441_v56 }
 0x43b   :  { %341 = vrot.lane.b32.xlu0 %v339_v55, %s2329_s3 }
 0x43c   :  { %445 = vrot.lane.b32.xlu1 %v443_v57, %s2329_s3 }
 0x4ad   :  { %v342_v60 = vpop.permute.xlu0 %341 }
 0x4ae   :  { %v2472_v62 = vadd.f32 %v342_v60, %v334_v59  ;;  %v446_v63 = vpop.permute.xlu1 %445 }
 0x4af   :  { %v2474_v1 = vadd.f32 %v446_v63, %v438_v61 }
 0x4b0   :  { %2197 = vtanh.f32 %v2472_v62 }
 0x4b1   :  { %2199 = vtanh.f32 %v2474_v1  ;;  %v652_v47 = vrot.slane %v2474_v1, 6 }
 0x4bd   :  { %v2198_v2 = vpop.eup %2197 }
 0x4be   :  { %v2200_v3 = vpop.eup %2199  ;;  %347 = vrot.lane.b32.xlu0 %v2198_v2, %s2330_s13 }
 0x4bf   :  { %451 = vrot.lane.b32.xlu1 %v2200_v3, %s2330_s13 }
 0x530   :  { %v348_v6 = vpop.permute.xlu0 %347 }
 0x531   :  { %v2480_v7 = vmul.f32 %v2194_v48, %v348_v6  ;;  %v452_v9 = vpop.permute.xlu1 %451 }
 0x532   :  { %v454_v11 = vmul.f32 %v2196_v49, %v452_v9 }
 0x533   :  { %v460_v12 = vrot.slane %v2480_v7, 6 }
 0x534   :  { %456 = vrot.lane.b32.xlu0 %v454_v11, %s2331_s14  ;;  %v564_v13 = vrot.slane %v454_v11, 2 }
 0x535   :  { %461 = vrot.lane.b32.xlu1 %v460_v12, %s2328_s12 }
 0x538   :  { %565 = vrot.lane.b32.xlu0 %v564_v13, %s2331_s14 }
 0x5a6   :  { %v457_v14 = vpop.permute.xlu0 %456 }
 0x5a7   :  { %v462_v15 = vpop.permute.xlu1 %461 }
 0x5a8   :  { %v464_v16 = vsel %vm141_vm3, %v457_v14, %v462_v15 }
 0x5a9   :  { %v466_v17 = vrot.slane %v464_v16, 2 }
 0x5aa   :  { %v566_v18 = vpop.permute.xlu0 %565 }
 0x5ab   :  { %2060 = vmatmul.mubr.msk.f32.vlgmr.msra.gmra.mxu1 %vm252_vm4, %v466_v17  ;;  %2067 = vmatmul.mubr.msk.f32.vlgmr.msra.gmra.mxu0 %vm141_vm3, %v566_v18 }
 0x5ac   :  { %2070 = vmatpush3.msra.mxu0 %v2423_v25  ;;  %2081 = vmatpush3.msra.mxu1 %v2389_v4 }
 0x5ad   :  { %2071 = vmatprep.subr.mxu0 %v2326_v0  ;;  %2077 = vmatprep.mubr.msk.f32.mxu0 %vm2327_vm0, %v2326_v0 }
 0x5ae   :  { %2072 = vmatpush3.msra.mxu0 %v2425_v26  ;;  %2082 = vmatprep.subr.mxu1 %v2326_v0 }
 0x5af   :  { %2073 = vmatprep.subr.mxu0 %v2326_v0  ;;  %2083 = vmatpush3.msra.mxu1 %v2396_v5 }
 0x5b0   :  { %2074 = vmatpush3.msra.mxu0 %v2429_v27  ;;  %2084 = vmatprep.mubr.msk.f32.mxu1 %vm2327_vm0, %v2326_v0 }
 0x5b1   :  { %2075 = vmatprep.subr.mxu0 %v2326_v0  ;;  %2087 = vmatprep.subr.mxu1 %v2326_v0 }
 0x5b2   :  { %2076 = vmatpush3.msra.mxu0 %v2436_v29 }
 0x5b3   :  { %2098 = vmatprep.subr.mxu0 %v2326_v0 }
 0x66b   :  { %v535_v19 = vpop.f32.mrf.mxu1  ;;  %v635_v20 = vpop.f32.mrf.mxu0 }
 0x66c   :  { %v536_v21 = vadd.f32 %v2463_v34, %v535_v19  ;;  %v640_v22 = vrot.slane %v635_v20, 4 }
 0x66d   :  { %v2061_v23 = vpop.f32.mrf.mxu1  ;;  %v2068_v24 = vpop.f32.mrf.mxu0 }
 0x66e   :  { %v1916_v28 = vmul.f32 -1.442695, %v536_v21  ;;  %v642_v30 = vadd.f32 %v640_v22, %v2415_v10 }
 0x670   :  { %2201 = vpow2.f32 %v1916_v28  ;;  %v1919_v31 = vmul.f32 -1.442695, %v642_v30 }
 0x672   :  { %2203 = vpow2.f32 %v1919_v31 }
 0x67d   :  { %v2202_v32 = vpop.eup %2201 }
 0x67e   :  { %v542_v33 = vadd.f32 1.0, %v2202_v32 }
 0x67f   :  { %v2204_v35 = vpop.eup %2203 }
 0x680   :  { %2205 = vrcp.f32 %v542_v33  ;;  %v646_v36 = vadd.f32 1.0, %v2204_v35 }
 0x682   :  { %2207 = vrcp.f32 %v646_v36 }
 0x68d   :  { %v2206_v37 = vpop.eup %2205 }
 0x68e   :  { %v545_v38 = vmul.f32 2.0, %v2206_v37  ;;  %v547_v48 = vmul.f32 %v2206_v37, %v2472_v62 }
 0x68f   :  { %v2208_v39 = vpop.eup %2207 }
 0x690   :  { %v1917_v40 = vadd.f32 -1.0, %v545_v38  ;;  %v649_v41 = vmul.f32 2.0, %v2208_v39  ;;  %v654_v51 = vmul.f32 %v2208_v39, %v652_v47 }
 0x692   :  { %549 = vrot.lane.b32.xlu1 %v1917_v40, %s2328_s12  ;;  %v1920_v42 = vadd.f32 -1.0, %v649_v41 }
 0x694   :  { %656 = vrot.lane.b32.xlu0 %v1920_v42, %s2328_s12 }
 0x704   :  { %v550_v43 = vpop.permute.xlu1 %549 }
 0x705   :  { %v552_v44 = vmul.f32 %v2206_v37, %v550_v43 }
 0x706   :  { %v657_v45 = vpop.permute.xlu0 %656 }
 0x707   :  { %v659_v46 = vmul.f32 %v2208_v39, %v657_v45  ;;  %554 = vrot.lane.b32.xlu1 %v552_v44, %s2329_s3 }
 0x709   :  { %661 = vrot.lane.b32.xlu0 %v659_v46, %s2329_s3 }
 0x779   :  { %v555_v49 = vpop.permute.xlu1 %554 }
 0x77a   :  { %v2513_v50 = vadd.f32 %v555_v49, %v547_v48 }
 0x77b   :  { %v662_v52 = vpop.permute.xlu0 %661 }
 0x77c   :  { %2209 = vtanh.f32 %v2513_v50  ;;  %v2516_v53 = vadd.f32 %v662_v52, %v654_v51 }
 0x77e   :  { %2211 = vtanh.f32 %v2516_v53 }
 0x789   :  { %v2210_v54 = vpop.eup %2209 }
 0x78a   :  { %560 = vrot.lane.b32.xlu1 %v2210_v54, %s2330_s13 }
 0x78b   :  { %v2212_v55 = vpop.eup %2211 }
 0x78c   :  { %667 = vrot.lane.b32.xlu0 %v2212_v55, %s2330_s13 }
 0x7fc   :  { %v561_v56 = vpop.permute.xlu1 %560 }
 0x7fd   :  { %v2521_v57 = vmul.f32 %v2206_v37, %v561_v56  ;;  %v868_v37 = vrot.slane %v2516_v53, 6 }
 0x7fe   :  { %v668_v58 = vpop.permute.xlu0 %667 }
 0x7ff   :  { %v676_v59 = vrot.slane %v2521_v57, 4  ;;  %v670_v60 = vmul.f32 %v2208_v39, %v668_v58 }
 0x801   :  { %677 = vrot.lane.b32.xlu0 %v676_v59, %s2328_s12  ;;  %672 = vrot.lane.b32.xlu1 %v670_v60, %s2331_s14  ;;  %v780_v61 = vrot.slane %v670_v60, 4 }
 0x805   :  { %781 = vrot.lane.b32.xlu1 %v780_v61, %s2331_s14 }
 0x873   :  { %v673_v62 = vpop.permute.xlu1 %672  ;;  %v678_v63 = vpop.permute.xlu0 %677 }
 0x874   :  { %v680_v1 = vsel %vm141_vm3, %v673_v62, %v678_v63 }
 0x875   :  { %v682_v2 = vrot.slane %v680_v1, 4 }
 0x877   :  { %v782_v3 = vpop.permute.xlu1 %781  ;;  %2078 = vmatmul.mubr.msk.f32.vlgmr.msra.gmra.mxu0 %vm252_vm4, %v682_v2 }
 0x878   :  { %2085 = vmatmul.mubr.msk.f32.vlgmr.msra.gmra.mxu1 %vm141_vm3, %v782_v3  ;;  %2099 = vmatpush3.msra.mxu0 %v2389_v4 }
 0x879   :  { %2088 = vmatpush3.msra.mxu1 %v2423_v25  ;;  %2095 = vmatprep.mubr.msk.f32.mxu1 %vm2327_vm0, %v2326_v0 }
 0x87a   :  { %2089 = vmatprep.subr.mxu1 %v2326_v0  ;;  %2100 = vmatprep.subr.mxu0 %v2326_v0 }
 0x87b   :  { %2090 = vmatpush3.msra.mxu1 %v2425_v26  ;;  %2101 = vmatpush3.msra.mxu0 %v2396_v5 }
 0x87c   :  { %2091 = vmatprep.subr.mxu1 %v2326_v0  ;;  %2102 = vmatprep.mubr.msk.f32.mxu0 %vm2327_vm0, %v2326_v0 }
 0x87d   :  { %2092 = vmatpush3.msra.mxu1 %v2429_v27  ;;  %2105 = vmatprep.subr.mxu0 %v2326_v0 }
 0x87e   :  { %2093 = vmatprep.subr.mxu1 %v2326_v0 }
 0x87f   :  { %2094 = vmatpush3.msra.mxu1 %v2436_v29 }
 0x880   :  { %2116 = vmatprep.subr.mxu1 %v2326_v0 }
 0x937   :  { %v751_v6 = vpop.f32.mrf.mxu0 }
 0x938   :  { %v752_v9 = vadd.f32 %v2463_v34, %v751_v6  ;;  %v851_v11 = vpop.f32.mrf.mxu1 }
 0x939   :  { %v856_v12 = vrot.slane %v851_v11, 2  ;;  %v2079_v13 = vpop.f32.mrf.mxu0 }
 0x93a   :  { %v1922_v14 = vmul.f32 -1.442695, %v752_v9  ;;  %v2086_v15 = vpop.f32.mrf.mxu1 }
 0x93b   :  { %v858_v16 = vadd.f32 %v856_v12, %v2415_v10 }
 0x93c   :  { %2213 = vpow2.f32 %v1922_v14 }
 0x93d   :  { %v1925_v17 = vmul.f32 -1.442695, %v858_v16 }
 0x93f   :  { %2215 = vpow2.f32 %v1925_v17 }
 0x949   :  { %v2214_v18 = vpop.eup %2213 }
 0x94a   :  { %v758_v19 = vadd.f32 1.0, %v2214_v18 }
 0x94c   :  { %v2216_v20 = vpop.eup %2215  ;;  %2217 = vrcp.f32 %v758_v19 }
 0x94d   :  { %v862_v21 = vadd.f32 1.0, %v2216_v20 }
 0x94f   :  { %2219 = vrcp.f32 %v862_v21 }
 0x959   :  { %v2218_v22 = vpop.eup %2217 }
 0x95a   :  { %v761_v23 = vmul.f32 2.0, %v2218_v22  ;;  %v763_v36 = vmul.f32 %v2218_v22, %v2513_v50 }
 0x95c   :  { %v2220_v24 = vpop.eup %2219  ;;  %v1923_v28 = vadd.f32 -1.0, %v761_v23 }
 0x95d   :  { %v865_v30 = vmul.f32 2.0, %v2220_v24  ;;  %v870_v40 = vmul.f32 %v2220_v24, %v868_v37 }
 0x95e   :  { %765 = vrot.lane.b32.xlu0 %v1923_v28, %s2328_s12 }
 0x95f   :  { %v1926_v31 = vadd.f32 -1.0, %v865_v30 }
 0x961   :  { %872 = vrot.lane.b32.xlu1 %v1926_v31, %s2328_s12 }
 0x9d0   :  { %v766_v10 = vpop.permute.xlu0 %765 }
 0x9d1   :  { %v768_v32 = vmul.f32 %v2218_v22, %v766_v10 }
 0x9d3   :  { %v873_v33 = vpop.permute.xlu1 %872  ;;  %770 = vrot.lane.b32.xlu0 %v768_v32, %s2329_s3 }
 0x9d4   :  { %v875_v35 = vmul.f32 %v2220_v24, %v873_v33 }
 0x9d6   :  { %877 = vrot.lane.b32.xlu1 %v875_v35, %s2329_s3 }
 0xa45   :  { %v771_v38 = vpop.permute.xlu0 %770 }
 0xa46   :  { %v2554_v39 = vadd.f32 %v771_v38, %v763_v36 }
 0xa48   :  { %2221 = vtanh.f32 %v2554_v39  ;;  %v878_v41 = vpop.permute.xlu1 %877 }
 0xa49   :  { %v2557_v42 = vadd.f32 %v878_v41, %v870_v40 }
 0xa4b   :  { %2223 = vtanh.f32 %v2557_v42  ;;  %v1081_v21 = vrot.slane %v2557_v42, 6 }
 0xa55   :  { %v2222_v43 = vpop.eup %2221 }
 0xa56   :  { %776 = vrot.lane.b32.xlu0 %v2222_v43, %s2330_s13 }
 0xa58   :  { %v2224_v44 = vpop.eup %2223 }
 0xa59   :  { %883 = vrot.lane.b32.xlu1 %v2224_v44, %s2330_s13 }
 0xac8   :  { %v777_v45 = vpop.permute.xlu0 %776 }
 0xac9   :  { %v2562_v46 = vmul.f32 %v2218_v22, %v777_v45 }
 0xacb   :  { %v892_v47 = vrot.slane %v2562_v46, 2  ;;  %v884_v48 = vpop.permute.xlu1 %883 }
 0xacc   :  { %v886_v49 = vmul.f32 %v2220_v24, %v884_v48 }
 0xacd   :  { %893 = vrot.lane.b32.xlu1 %v892_v47, %s2328_s12 }
 0xace   :  { %888 = vrot.lane.b32.xlu0 %v886_v49, %s2331_s14  ;;  %v996_v50 = vrot.slane %v886_v49, 6 }
 0xad2   :  { %997 = vrot.lane.b32.xlu0 %v996_v50, %s2331_s14 }
 0xb3f   :  { %v894_v51 = vpop.permute.xlu1 %893 }
 0xb40   :  { %v889_v52 = vpop.permute.xlu0 %888 }
 0xb41   :  { %v896_v53 = vsel %vm141_vm3, %v889_v52, %v894_v51 }
 0xb42   :  { %v898_v54 = vrot.slane %v896_v53, 6 }
 0xb44   :  { %2096 = vmatmul.mubr.msk.f32.vlgmr.msra.gmra.mxu1 %vm252_vm4, %v898_v54  ;;  %v998_v55 = vpop.permute.xlu0 %997 }
 0xb45   :  { %2103 = vmatmul.mubr.msk.f32.vlgmr.msra.gmra.mxu0 %vm141_vm3, %v998_v55  ;;  %2117 = vmatpush3.msra.mxu1 %v2389_v4 }
 0xb46   :  { %2106 = vmatpush3.msra.mxu0 %v2423_v25  ;;  %2118 = vmatprep.subr.mxu1 %v2326_v0 }
 0xb47   :  { %2107 = vmatprep.subr.mxu0 %v2326_v0  ;;  %2119 = vmatpush3.msra.mxu1 %v2396_v5 }
 0xb48   :  { %2108 = vmatpush3.msra.mxu0 %v2425_v26  ;;  %2120 = vmatprep.mubr.msk.f32.mxu1 %vm2327_vm0, %v2326_v0 }
 0xb49   :  { %2109 = vmatprep.subr.mxu0 %v2326_v0  ;;  %2113 = vmatprep.mubr.msk.f32.mxu0 %vm2327_vm0, %v2326_v0 }
 0xb4a   :  { %2110 = vmatpush3.msra.mxu0 %v2429_v27  ;;  %2123 = vmatprep.subr.mxu1 %v2326_v0 }
 0xb4b   :  { %2111 = vmatprep.subr.mxu0 %v2326_v0 }
 0xb4c   :  { %2112 = vmatpush3.msra.mxu0 %v2436_v29 }
 0xb4d   :  { %2134 = vmatprep.subr.mxu0 %v2326_v0 }
 0xc04   :  { %v967_v56 = vpop.f32.mrf.mxu1 }
 0xc05   :  { %v968_v58 = vadd.f32 %v2463_v34, %v967_v56  ;;  %v1067_v59 = vpop.f32.mrf.mxu0 }
 0xc06   :  { %v1071_v60 = vadd.f32 %v1067_v59, %v2413_v8  ;;  %v2097_v61 = vpop.f32.mrf.mxu1 }
 0xc07   :  { %v1928_v62 = vmul.f32 -1.442695, %v968_v58  ;;  %v2104_v63 = vpop.f32.mrf.mxu0 }
 0xc08   :  { %v1931_v1 = vmul.f32 -1.442695, %v1071_v60 }
 0xc09   :  { %2225 = vpow2.f32 %v1928_v62 }
 0xc0a   :  { %2227 = vpow2.f32 %v1931_v1 }
 0xc16   :  { %v2226_v2 = vpop.eup %2225 }
 0xc17   :  { %v2228_v3 = vpop.eup %2227  ;;  %v974_v6 = vadd.f32 1.0, %v2226_v2 }
 0xc18   :  { %v1075_v9 = vadd.f32 1.0, %v2228_v3 }
 0xc19   :  { %2229 = vrcp.f32 %v974_v6 }
 0xc1a   :  { %2231 = vrcp.f32 %v1075_v9 }
 0xc26   :  { %v2230_v11 = vpop.eup %2229 }
 0xc27   :  { %v2232_v12 = vpop.eup %2231  ;;  %v977_v13 = vmul.f32 2.0, %v2230_v11  ;;  %v979_v22 = vmul.f32 %v2230_v11, %v2554_v39 }
 0xc28   :  { %v1078_v14 = vmul.f32 2.0, %v2232_v12  ;;  %v1083_v24 = vmul.f32 %v2232_v12, %v1081_v21 }
 0xc29   :  { %v1929_v15 = vadd.f32 -1.0, %v977_v13 }
 0xc2a   :  { %v1932_v16 = vadd.f32 -1.0, %v1078_v14 }
 0xc2b   :  { %981 = vrot.lane.b32.xlu1 %v1929_v15, %s2328_s12 }
 0xc2c   :  { %1085 = vrot.lane.b32.xlu0 %v1932_v16, %s2328_s12 }
 0xc9d   :  { %v982_v17 = vpop.permute.xlu1 %981 }
 0xc9e   :  { %v984_v18 = vmul.f32 %v2230_v11, %v982_v17  ;;  %v1086_v19 = vpop.permute.xlu0 %1085 }
 0xc9f   :  { %v1088_v20 = vmul.f32 %v2232_v12, %v1086_v19 }
 0xca0   :  { %986 = vrot.lane.b32.xlu1 %v984_v18, %s2329_s3 }
 0xca1   :  { %1090 = vrot.lane.b32.xlu0 %v1088_v20, %s2329_s3 }
 0xd12   :  { %v987_v23 = vpop.permute.xlu1 %986 }
 0xd13   :  { %v2595_v28 = vadd.f32 %v987_v23, %v979_v22  ;;  %v1091_v30 = vpop.permute.xlu0 %1090 }
 0xd14   :  { %v2597_v31 = vadd.f32 %v1091_v30, %v1083_v24 }
 0xd15   :  { %2233 = vtanh.f32 %v2595_v28 }
 0xd16   :  { %2235 = vtanh.f32 %v2597_v31  ;;  %v1292_v3 = vrot.slane %v2597_v31, 6 }
 0xd22   :  { %v2234_v10 = vpop.eup %2233 }
 0xd23   :  { %v2236_v32 = vpop.eup %2235  ;;  %992 = vrot.lane.b32.xlu1 %v2234_v10, %s2330_s13 }
 0xd24   :  { %1096 = vrot.lane.b32.xlu0 %v2236_v32, %s2330_s13 }
 0xd95   :  { %v993_v33 = vpop.permute.xlu1 %992 }
 0xd96   :  { %v2603_v35 = vmul.f32 %v2230_v11, %v993_v33  ;;  %v1097_v36 = vpop.permute.xlu0 %1096 }
 0xd97   :  { %v1099_v37 = vmul.f32 %v2232_v12, %v1097_v36 }
 0xd98   :  { %1105 = vrot.lane.b32.xlu0 %v2603_v35, %s2328_s12 }
 0xd99   :  { %1101 = vrot.lane.b32.xlu1 %v1099_v37, %s2331_s14 }
 0xe0a   :  { %v1106_v38 = vpop.permute.xlu0 %1105 }
 0xe0b   :  { %v1102_v39 = vpop.permute.xlu1 %1101 }
 0xe0c   :  { %v1108_v40 = vsel %vm141_vm3, %v1102_v39, %v1106_v38  ;;  %2121 = vmatmul.mubr.msk.f32.vlgmr.msra.gmra.mxu1 %vm141_vm3, %v1102_v39 }
 0xe0d   :  { %2114 = vmatmul.mubr.msk.f32.vlgmr.msra.gmra.mxu0 %vm252_vm4, %v1108_v40  ;;  %2124 = vmatpush3.msra.mxu1 %v2423_v25 }
 0xe0e   :  { %2125 = vmatprep.subr.mxu1 %v2326_v0  ;;  %2135 = vmatpush3.msra.mxu0 %v2389_v4 }
 0xe0f   :  { %2126 = vmatpush3.msra.mxu1 %v2425_v26  ;;  %2136 = vmatprep.subr.mxu0 %v2326_v0 }
 0xe10   :  { %2127 = vmatprep.subr.mxu1 %v2326_v0  ;;  %2131 = vmatprep.mubr.msk.f32.mxu1 %vm2327_vm0, %v2326_v0 }
 0xe11   :  { %2128 = vmatpush3.msra.mxu1 %v2429_v27  ;;  %2137 = vmatpush3.msra.mxu0 %v2396_v5 }
 0xe12   :  { %2129 = vmatprep.subr.mxu1 %v2326_v0  ;;  %2138 = vmatprep.mubr.msk.f32.mxu0 %vm2327_vm0, %v2326_v0 }
 0xe13   :  { %2130 = vmatpush3.msra.mxu1 %v2436_v29  ;;  %2141 = vmatprep.subr.mxu0 %v2326_v0 }
 0xe14   :  { %2152 = vmatprep.subr.mxu1 %v2326_v0 }
 0xecc   :  { %v1275_v41 = vpop.f32.mrf.mxu1 }
 0xecd   :  { %v1280_v42 = vrot.slane %v1275_v41, 6  ;;  %v1178_v43 = vpop.f32.mrf.mxu0 }
 0xece   :  { %v1179_v44 = vadd.f32 %v2463_v34, %v1178_v43  ;;  %v2122_v45 = vpop.f32.mrf.mxu1 }
 0xecf   :  { %v1282_v47 = vadd.f32 %v1280_v42, %v2413_v8  ;;  %v2115_v48 = vpop.f32.mrf.mxu0 }
 0xed0   :  { %v1934_v49 = vmul.f32 -1.442695, %v1179_v44 }
 0xed1   :  { %v1937_v50 = vmul.f32 -1.442695, %v1282_v47 }
 0xed2   :  { %2237 = vpow2.f32 %v1934_v49 }
 0xed3   :  { %2239 = vpow2.f32 %v1937_v50 }
 0xedf   :  { %v2238_v51 = vpop.eup %2237 }
 0xee0   :  { %v2240_v52 = vpop.eup %2239  ;;  %v1185_v53 = vadd.f32 1.0, %v2238_v51 }
 0xee1   :  { %v1286_v54 = vadd.f32 1.0, %v2240_v52 }
 0xee2   :  { %2241 = vrcp.f32 %v1185_v53 }
 0xee3   :  { %2243 = vrcp.f32 %v1286_v54 }
 0xeef   :  { %v2242_v55 = vpop.eup %2241 }
 0xef0   :  { %v2244_v56 = vpop.eup %2243  ;;  %v1188_v58 = vmul.f32 2.0, %v2242_v55  ;;  %v1190_v6 = vmul.f32 %v2242_v55, %v2595_v28 }
 0xef1   :  { %v1289_v59 = vmul.f32 2.0, %v2244_v56  ;;  %v1294_v11 = vmul.f32 %v2244_v56, %v1292_v3 }
 0xef2   :  { %v1935_v60 = vadd.f32 -1.0, %v1188_v58 }
 0xef3   :  { %v1938_v61 = vadd.f32 -1.0, %v1289_v59 }
 0xef4   :  { %1192 = vrot.lane.b32.xlu1 %v1935_v60, %s2328_s12 }
 0xef5   :  { %1296 = vrot.lane.b32.xlu0 %v1938_v61, %s2328_s12 }
 0xf66   :  { %v1193_v62 = vpop.permute.xlu1 %1192 }
 0xf67   :  { %v1195_v63 = vmul.f32 %v2242_v55, %v1193_v62  ;;  %v1297_v1 = vpop.permute.xlu0 %1296 }
 0xf68   :  { %v1299_v2 = vmul.f32 %v2244_v56, %v1297_v1 }
 0xf69   :  { %1197 = vrot.lane.b32.xlu1 %v1195_v63, %s2329_s3 }
 0xf6a   :  { %1301 = vrot.lane.b32.xlu0 %v1299_v2, %s2329_s3 }
 0xfdb   :  { %v1198_v9 = vpop.permute.xlu1 %1197 }
 0xfdc   :  { %v2635_v12 = vadd.f32 %v1198_v9, %v1190_v6  ;;  %v1302_v13 = vpop.permute.xlu0 %1301 }
 0xfdd   :  { %v2637_v14 = vadd.f32 %v1302_v13, %v1294_v11 }
 0xfde   :  { %2245 = vtanh.f32 %v2635_v12 }
 0xfdf   :  { %2247 = vtanh.f32 %v2637_v14 }
 0xfeb   :  { %v2246_v15 = vpop.eup %2245 }
 0xfec   :  { %v2248_v16 = vpop.eup %2247  ;;  %1203 = vrot.lane.b32.xlu1 %v2246_v15, %s2330_s13 }
 0xfed   :  { %1307 = vrot.lane.b32.xlu0 %v2248_v16, %s2330_s13 }
0x105e   :  { %v1204_v17 = vpop.permute.xlu1 %1203 }
0x105f   :  { %v2643_v18 = vmul.f32 %v2242_v55, %v1204_v17  ;;  %v1308_v19 = vpop.permute.xlu0 %1307  ;;  %v1508_v55 = vrot.slane %v2637_v14, 6 }
0x1060   :  { %v1310_v20 = vmul.f32 %v2244_v56, %v1308_v19 }
0x1061   :  { %v1316_v21 = vrot.slane %v2643_v18, 6 }
0x1062   :  { %1312 = vrot.lane.b32.xlu1 %v1310_v20, %s2331_s14  ;;  %v1420_v22 = vrot.slane %v1310_v20, 2 }
0x1063   :  { %1317 = vrot.lane.b32.xlu0 %v1316_v21, %s2328_s12 }
0x1066   :  { %1421 = vrot.lane.b32.xlu1 %v1420_v22, %s2331_s14 }
0x10d4   :  { %v1313_v23 = vpop.permute.xlu1 %1312 }
0x10d5   :  { %v1318_v24 = vpop.permute.xlu0 %1317 }
0x10d6   :  { %v1320_v28 = vsel %vm141_vm3, %v1313_v23, %v1318_v24 }
0x10d7   :  { %v1322_v30 = vrot.slane %v1320_v28, 2 }
0x10d8   :  { %v1422_v31 = vpop.permute.xlu1 %1421 }
0x10d9   :  { %2132 = vmatmul.mubr.msk.f32.vlgmr.msra.gmra.mxu1 %vm252_vm4, %v1322_v30  ;;  %2139 = vmatmul.mubr.msk.f32.vlgmr.msra.gmra.mxu0 %vm141_vm3, %v1422_v31 }
0x10da   :  { %2142 = vmatpush3.msra.mxu0 %v2423_v25  ;;  %2153 = vmatpush3.msra.mxu1 %v2389_v4 }
0x10db   :  { %2143 = vmatprep.subr.mxu0 %v2326_v0  ;;  %2149 = vmatprep.mubr.msk.f32.mxu0 %vm2327_vm0, %v2326_v0 }
0x10dc   :  { %2144 = vmatpush3.msra.mxu0 %v2425_v26  ;;  %2154 = vmatprep.subr.mxu1 %v2326_v0 }
0x10dd   :  { %2145 = vmatprep.subr.mxu0 %v2326_v0  ;;  %2155 = vmatpush3.msra.mxu1 %v2396_v5 }
0x10de   :  { %2146 = vmatpush3.msra.mxu0 %v2429_v27  ;;  %2156 = vmatprep.mubr.msk.f32.mxu1 %vm2327_vm0, %v2326_v0 }
0x10df   :  { %2147 = vmatprep.subr.mxu0 %v2326_v0  ;;  %2159 = vmatprep.subr.mxu1 %v2326_v0 }
0x10e0   :  { %2148 = vmatpush3.msra.mxu0 %v2436_v29 }
0x1199   :  { %v1391_v4 = vpop.f32.mrf.mxu1  ;;  %v1491_v10 = vpop.f32.mrf.mxu0 }
0x119a   :  { %v1392_v32 = vadd.f32 %v2463_v34, %v1391_v4  ;;  %v1496_v33 = vrot.slane %v1491_v10, 4 }
0x119b   :  { %v2133_v36 = vpop.f32.mrf.mxu1  ;;  %v2140_v37 = vpop.f32.mrf.mxu0 }
0x119c   :  { %v1940_v38 = vmul.f32 -1.442695, %v1392_v32  ;;  %v1498_v5 = vadd.f32 %v1496_v33, %v2413_v8 }
0x119e   :  { %2249 = vpow2.f32 %v1940_v38  ;;  %v1943_v39 = vmul.f32 -1.442695, %v1498_v5 }
0x11a0   :  { %2251 = vpow2.f32 %v1943_v39 }
0x11ab   :  { %v2250_v40 = vpop.eup %2249 }
0x11ac   :  { %v1398_v41 = vadd.f32 1.0, %v2250_v40 }
0x11ad   :  { %v2252_v42 = vpop.eup %2251 }
0x11ae   :  { %2253 = vrcp.f32 %v1398_v41  ;;  %v1502_v43 = vadd.f32 1.0, %v2252_v42 }
0x11b0   :  { %2255 = vrcp.f32 %v1502_v43 }
0x11bb   :  { %v2254_v44 = vpop.eup %2253 }
0x11bc   :  { %v1401_v45 = vmul.f32 2.0, %v2254_v44  ;;  %v1403_v56 = vmul.f32 %v2254_v44, %v2635_v12 }
0x11bd   :  { %v2256_v47 = vpop.eup %2255 }
0x11be   :  { %v1941_v48 = vadd.f32 -1.0, %v1401_v45  ;;  %v1505_v49 = vmul.f32 2.0, %v2256_v47  ;;  %v1510_v60 = vmul.f32 %v2256_v47, %v1508_v55 }
0x11c0   :  { %1405 = vrot.lane.b32.xlu0 %v1941_v48, %s2328_s12  ;;  %v1944_v50 = vadd.f32 -1.0, %v1505_v49 }
0x11c2   :  { %1512 = vrot.lane.b32.xlu1 %v1944_v50, %s2328_s12 }
0x1232   :  { %v1406_v51 = vpop.permute.xlu0 %1405 }
0x1233   :  { %v1408_v52 = vmul.f32 %v2254_v44, %v1406_v51 }
0x1234   :  { %v1513_v53 = vpop.permute.xlu1 %1512 }
0x1235   :  { %v1515_v54 = vmul.f32 %v2256_v47, %v1513_v53  ;;  %1410 = vrot.lane.b32.xlu0 %v1408_v52, %s2329_s3 }
0x1237   :  { %1517 = vrot.lane.b32.xlu1 %v1515_v54, %s2329_s3 }
0x12a7   :  { %v1411_v58 = vpop.permute.xlu0 %1410 }
0x12a8   :  { %v2675_v59 = vadd.f32 %v1411_v58, %v1403_v56 }
0x12a9   :  { %v1518_v61 = vpop.permute.xlu1 %1517 }
0x12aa   :  { %2257 = vtanh.f32 %v2675_v59  ;;  %v2678_v62 = vadd.f32 %v1518_v61, %v1510_v60 }
0x12ac   :  { %2259 = vtanh.f32 %v2678_v62  ;;  %v1724_v40 = vrot.slane %v2678_v62, 6 }
0x12b7   :  { %v2258_v63 = vpop.eup %2257 }
0x12b8   :  { %1416 = vrot.lane.b32.xlu0 %v2258_v63, %s2330_s13 }
0x12b9   :  { %v2260_v1 = vpop.eup %2259 }
0x12ba   :  { %1523 = vrot.lane.b32.xlu1 %v2260_v1, %s2330_s13 }
0x132a   :  { %v1417_v2 = vpop.permute.xlu0 %1416 }
0x132b   :  { %v2683_v3 = vmul.f32 %v2254_v44, %v1417_v2 }
0x132c   :  { %v1524_v6 = vpop.permute.xlu1 %1523 }
0x132d   :  { %v1532_v9 = vrot.slane %v2683_v3, 4  ;;  %v1526_v11 = vmul.f32 %v2256_v47, %v1524_v6 }
0x132f   :  { %1533 = vrot.lane.b32.xlu1 %v1532_v9, %s2328_s12  ;;  %1528 = vrot.lane.b32.xlu0 %v1526_v11, %s2331_s14  ;;  %v1636_v12 = vrot.slane %v1526_v11, 4 }
0x1333   :  { %1637 = vrot.lane.b32.xlu0 %v1636_v12, %s2331_s14 }
0x13a1   :  { %v1529_v13 = vpop.permute.xlu0 %1528  ;;  %v1534_v14 = vpop.permute.xlu1 %1533 }
0x13a2   :  { %v1536_v15 = vsel %vm141_vm3, %v1529_v13, %v1534_v14 }
0x13a3   :  { %v1538_v16 = vrot.slane %v1536_v15, 4 }
0x13a5   :  { %v1638_v17 = vpop.permute.xlu0 %1637  ;;  %2150 = vmatmul.mubr.msk.f32.vlgmr.msra.gmra.mxu0 %vm252_vm4, %v1538_v16 }
0x13a6   :  { %2157 = vmatmul.mubr.msk.f32.vlgmr.msra.gmra.mxu1 %vm141_vm3, %v1638_v17 }
0x13a7   :  { %2160 = vmatpush3.msra.mxu1 %v2423_v25  ;;  %2167 = vmatprep.mubr.msk.f32.mxu1 %vm2327_vm0, %v2326_v0 }
0x13a8   :  { %2161 = vmatprep.subr.mxu1 %v2326_v0 }
0x13a9   :  { %2162 = vmatpush3.msra.mxu1 %v2425_v26 }
0x13aa   :  { %2163 = vmatprep.subr.mxu1 %v2326_v0 }
0x13ab   :  { %2164 = vmatpush3.msra.mxu1 %v2429_v27 }
0x13ac   :  { %2165 = vmatprep.subr.mxu1 %v2326_v0 }
0x13ad   :  { %2166 = vmatpush3.msra.mxu1 %v2436_v29 }
0x1465   :  { %v1607_v19 = vpop.f32.mrf.mxu0 }
0x1466   :  { %v1608_v20 = vadd.f32 %v2463_v34, %v1607_v19  ;;  %v1707_v21 = vpop.f32.mrf.mxu1 }
0x1467   :  { %v1712_v25 = vrot.slane %v1707_v21, 2  ;;  %v2151_v22 = vpop.f32.mrf.mxu0 }
0x1468   :  { %v1946_v23 = vmul.f32 -1.442695, %v1608_v20  ;;  %v2158_v24 = vpop.f32.mrf.mxu1 }
0x1469   :  { %v1714_v28 = vadd.f32 %v1712_v25, %v2413_v8 }
0x146a   :  { %2261 = vpow2.f32 %v1946_v23 }
0x146b   :  { %v1949_v26 = vmul.f32 -1.442695, %v1714_v28 }
0x146d   :  { %2263 = vpow2.f32 %v1949_v26 }
0x1477   :  { %v2262_v30 = vpop.eup %2261 }
0x1478   :  { %v1614_v31 = vadd.f32 1.0, %v2262_v30 }
0x147a   :  { %v2264_v27 = vpop.eup %2263  ;;  %2265 = vrcp.f32 %v1614_v31 }
0x147b   :  { %v1718_v0 = vadd.f32 1.0, %v2264_v27 }
0x147d   :  { %2267 = vrcp.f32 %v1718_v0 }
0x1487   :  { %v2266_v29 = vpop.eup %2265 }
0x1488   :  { %v1617_v4 = vmul.f32 2.0, %v2266_v29  ;;  %v1619_v39 = vmul.f32 %v2266_v29, %v2675_v59 }
0x148a   :  { %v2268_v10 = vpop.eup %2267  ;;  %v1947_v32 = vadd.f32 -1.0, %v1617_v4 }
0x148b   :  { %v1721_v33 = vmul.f32 2.0, %v2268_v10  ;;  %v1726_v43 = vmul.f32 %v2268_v10, %v1724_v40 }
0x148c   :  { %1621 = vrot.lane.b32.xlu1 %v1947_v32, %s2328_s12 }
0x148d   :  { %v1950_v36 = vadd.f32 -1.0, %v1721_v33 }
0x148f   :  { %1728 = vrot.lane.b32.xlu0 %v1950_v36, %s2328_s12 }
0x14fe   :  { %v1622_v8 = vpop.permute.xlu1 %1621 }
0x14ff   :  { %v1624_v37 = vmul.f32 %v2266_v29, %v1622_v8 }
0x1501   :  { %v1729_v38 = vpop.permute.xlu0 %1728  ;;  %1626 = vrot.lane.b32.xlu1 %v1624_v37, %s2329_s3 }
0x1502   :  { %v1731_v5 = vmul.f32 %v2268_v10, %v1729_v38 }
0x1504   :  { %1733 = vrot.lane.b32.xlu0 %v1731_v5, %s2329_s3 }
0x1573   :  { %v1627_v41 = vpop.permute.xlu1 %1626 }
0x1574   :  { %v1629_v42 = vadd.f32 %v1627_v41, %v1619_v39 }
0x1576   :  { %2269 = vtanh.f32 %v1629_v42  ;;  %v1734_v44 = vpop.permute.xlu0 %1733 }
0x1577   :  { %v1736_v45 = vadd.f32 %v1734_v44, %v1726_v43 }
0x1579   :  { %2271 = vtanh.f32 %v1736_v45 }
0x1583   :  { %v2270_v47 = vpop.eup %2269 }
0x1584   :  { %1632 = vrot.lane.b32.xlu1 %v2270_v47, %s2330_s13 }
0x1586   :  { %v2272_v48 = vpop.eup %2271 }
0x1587   :  { %1739 = vrot.lane.b32.xlu0 %v2272_v48, %s2330_s13 }
0x15f6   :  { %v1633_v49 = vpop.permute.xlu1 %1632 }
0x15f7   :  { %v1635_v50 = vmul.f32 %v2266_v29, %v1633_v49 }
0x15f9   :  { %v1748_v51 = vrot.slane %v1635_v50, 2  ;;  %v1740_v52 = vpop.permute.xlu0 %1739 }
0x15fa   :  { %v1742_v53 = vmul.f32 %v2268_v10, %v1740_v52 }
0x15fb   :  { %1749 = vrot.lane.b32.xlu0 %v1748_v51, %s2328_s12 }
0x15fc   :  { %1744 = vrot.lane.b32.xlu1 %v1742_v53, %s2331_s14 }
0x166d   :  { %v1750_v54 = vpop.permute.xlu0 %1749 }
0x166e   :  { %v1745_v55 = vpop.permute.xlu1 %1744 }
0x166f   :  { %v1752_v56 = vsel %vm141_vm3, %v1745_v55, %v1750_v54 }
0x1670   :  { %v1754_v58 = vrot.slane %v1752_v56, 6 }
0x1672   :  { %2168 = vmatmul.mubr.msk.f32.vlgmr.msra.gmra.mxu1 %vm252_vm4, %v1754_v58 }
0x1732   :  { %v1823_v59 = vpop.f32.mrf.mxu1 }
0x1733   :  { %v1824_v60 = vadd.f32 %v2463_v34, %v1823_v59 }
0x1734   :  { %v2169_v61 = vpop.f32.mrf.mxu1 }
0x1735   :  { %v1952_v62 = vmul.f32 -1.442695, %v1824_v60 }
0x1737   :  { %2273 = vpow2.f32 %v1952_v62 }
0x1744   :  { %v2274_v63 = vpop.eup %2273 }
0x1745   :  { %v1830_v1 = vadd.f32 1.0, %v2274_v63 }
0x1747   :  { %2275 = vrcp.f32 %v1830_v1 }
0x1754   :  { %v2276_v2 = vpop.eup %2275 }
0x1755   :  { %v1833_v6 = vmul.f32 2.0, %v2276_v2  ;;  %v1835_v34 = vmul.f32 %v2276_v2, %v1629_v42 }
0x1757   :  { %v1953_v9 = vadd.f32 -1.0, %v1833_v6 }
0x1759   :  { %1837 = vrot.lane.b32.xlu1 %v1953_v9, %s2328_s12 }
0x17cb   :  { %v1838_v11 = vpop.permute.xlu1 %1837 }
0x17cc   :  { %v1840_v12 = vmul.f32 %v2276_v2, %v1838_v11 }
0x17ce   :  { %1842 = vrot.lane.b32.xlu0 %v1840_v12, %s2329_s3 }
0x17d2   :  { %1852 = vrot.lane.b32.xlu0 %v2480_v7, %s2331_s14 }
0x17d6   :  { %1858 = vrot.lane.b32.xlu0 %v2562_v46, %s2332_s5 }
0x17da   :  { %1864 = vrot.lane.b32.xlu0 %v2683_v3, %s2330_s13 }
0x1840   :  { %v1843_v13 = vpop.permute.xlu0 %1842 }
0x1841   :  { %v1845_v14 = vadd.f32 %v1843_v13, %v1835_v34 }
0x1843   :  { %2277 = vtanh.f32 %v1845_v14 }
0x1844   :  { %v1853_v3 = vpop.permute.xlu0 %1852 }
0x1848   :  { %v1859_v19 = vpop.permute.xlu0 %1858 }
0x184c   :  { %v1865_v25 = vpop.permute.xlu0 %1864 }
0x1850   :  { %v2278_v15 = vpop.eup %2277 }
0x1851   :  { %1848 = vrot.lane.b32.xlu1 %v2278_v15, %s2330_s13 }
0x1855   :  { %1855 = vrot.lane.b32.xlu1 %v2521_v57, %s2328_s12 }
0x1859   :  { %1861 = vrot.lane.b32.xlu1 %v2643_v18, %s2329_s3 }
0x185d   :  { %1867 = vrot.lane.b32.xlu1 %v1635_v50, %s2333_s17 }
0x18c3   :  { %v1849_v7 = vpop.permute.xlu1 %1848 }
0x18c4   :  { %v1851_v46 = vmul.f32 %v2276_v2, %v1849_v7 }
0x18c6   :  { %1871 = vrot.lane.b32.xlu0 %v1851_v46, %s2334_s18 }
0x18c7   :  { %v1856_v16 = vpop.permute.xlu1 %1855 }
0x18c8   :  { %v1874_v17 = vsel %vm141_vm3, %v1853_v3, %v1856_v16 }
0x18c9   :  { %v1875_v20 = vsel %vm252_vm4, %v1874_v17, %v1859_v19 }
0x18ca   :  { %v1877_v57 = vsel %vm1876_vm5, %v1875_v20, %v2603_v35 }
0x18cb   :  { %v1862_v21 = vpop.permute.xlu1 %1861 }
0x18cc   :  { %v1879_v18 = vsel %vm1878_vm6, %v1877_v57, %v1862_v21 }
0x18cd   :  { %v1881_v23 = vsel %vm1880_vm7, %v1879_v18, %v1865_v25 }
0x18cf   :  { %v1868_v22 = vpop.permute.xlu1 %1867 }
0x18d0   :  { %v1883_v24 = vsel %vm1882_vm8, %v1881_v23, %v1868_v22 }
0x1938   :  { %v1872_v28 = vpop.permute.xlu0 %1871 }
0x1939   :  { %v1885_v26 = vsel %vm1884_vm9, %v1883_v24, %v1872_v28 }
0x193a   :  { %1886 = vst [vmem:[#allocation5] sm:$0x3] %v1885_v26 }
0x193b   :  { %2310 = shalt.err (!%p2307_p9)
}
0x193c   :  { %1896 = dma.vmem_to_hbm [thread:$0]  %s1894_s20, 32, %s2740_s6, [#allocation4]  }
0x193d   :  { %2321 = dma.done.wait [#allocation4], 32  }
0x193e   :  { %2322 = vsyncadd [#allocation4], 4294967264 }
0x193f   :  { %1900 = vsyncpa [#allocation3], 1 }
0x1940   :  { %1901 = vsyncpa [#allocation4], 1 }

</bundles_post_ra>
